<compile_context>
chip_gen: v7x
topology: tpu7x:2x2x1
jax: 0.10.0
libtpu: 0.0.40
codegen_flags: <defaults>
</compile_context>

<pallas_src>
import functools

import jax
import jax.numpy as jnp
from jax import lax
from jax.experimental import pallas as pl
from jax.experimental.pallas import tpu as pltpu

NEG_SLOPE = 0.01   # nn.LeakyReLU default
EPS = 1e-12        # F.normalize default eps
LANE = 128
SUBLANE = 8


def _leaky_relu(x):
    return jnp.where(x >= 0.0, x, NEG_SLOPE * x)


def _l2_normalize_rows(x):
    # F.normalize(p=2, dim=1): x / max(||x||, eps); rsqrt keeps this on the EUP.
    ss = jnp.sum(x * x, axis=1, keepdims=True)
    inv = jnp.where(ss > EPS * EPS, lax.rsqrt(ss), 1.0 / EPS)
    return x * inv


def graphsage_kernel(indptr_ref, col_ref,                       # scalar prefetch (SMEM)
                     x_hbm_ref, invdeg_ref, batch_ref,          # node data
                     wl_ref, wr_ref, w1h_ref, w1x_ref, b1_ref,  # weights
                     w3_ref, b3_ref,
                     out_ref,                                    # (Gp, Hp)
                     xn_ref, agg_ref, pooled_ref):               # VMEM scratch
    i = pl.program_id(0)
    tm, fp = agg_ref.shape
    gp, hp = out_ref.shape
    row0 = pl.multiple_of(i * tm, tm)

    # ---- one-shot setup: single resident copy of (pre-normalized) features ----
    @pl.when(i == 0)
    def _init():
        pltpu.sync_copy(x_hbm_ref, xn_ref)            # 1 DMA, single-buffered
        pooled_ref[...] = jnp.zeros_like(pooled_ref)

    # ---- sparse CSR mean aggregation: register accumulate per destination row -
    # Edges are dst-sorted; for destination row (row0 + r) its edges are
    # indptr[row0+r] .. indptr[row0+r+1].  The neighbor sum lives in a (1, Fp)
    # register carry and is stored to agg_ref exactly once per row, so there is
    # no per-edge VMEM read-modify-write chain on the store slot.
    def _row(r, carry):
        e_lo = indptr_ref[row0 + r]
        e_hi = indptr_ref[row0 + r + 1]

        def _edge(e, acc):
            s = col_ref[e]                            # global source node id
            return acc + xn_ref[pl.ds(s, 1), :]

        acc = lax.fori_loop(e_lo, e_hi, _edge, jnp.zeros((1, fp), jnp.float32))
        agg_ref[pl.ds(r, 1), :] = acc
        return carry

    lax.fori_loop(0, tm, _row, 0)

    # mean = sum * (1/deg); 1/deg precomputed per node (0 for isolated / padded)
    agg = agg_ref[...] * invdeg_ref[...]

    # ---- dense per-tile compute: bf16 MXU operands, f32 accumulation ----------
    xt = xn_ref[pl.ds(row0, tm), :]
    xt_b = xt.astype(jnp.bfloat16)
    agg_b = agg.astype(jnp.bfloat16)

    # SAGEConv: lin_l(mean_agg) + lin_r(x), L2-normalize, LeakyReLU
    h = (jnp.dot(agg_b, wl_ref[...], preferred_element_type=jnp.float32) +
         jnp.dot(xt_b, wr_ref[...], preferred_element_type=jnp.float32))
    h = _leaky_relu(_l2_normalize_rows(h))

    # fc1: concat([h, x]) @ W1 + b1 == h @ W1h + x @ W1x + b1, LeakyReLU
    z = (jnp.dot(h.astype(jnp.bfloat16), w1h_ref[...],
                 preferred_element_type=jnp.float32) +
         jnp.dot(xt_b, w1x_ref[...], preferred_element_type=jnp.float32) +
         b1_ref[...])
    z = _leaky_relu(z)

    # ---- fused global_add_pool: one-hot(graph, node) @ z into VMEM accumulator
    onehot = (lax.broadcasted_iota(jnp.int32, (gp, tm), 0)
              == batch_ref[...]).astype(jnp.float32)
    pooled_ref[...] += jnp.dot(onehot, z, preferred_element_type=jnp.float32)

    # ---- finalize: fc3 + LeakyReLU + L2 row-normalize -------------------------
    @pl.when(i == pl.num_programs(0) - 1)
    def _finalize():
        o = (jnp.dot(pooled_ref[...], w3_ref[...],
                     preferred_element_type=jnp.float32) + b3_ref[...])
        out_ref[...] = _l2_normalize_rows(_leaky_relu(o))


def _round_up(v, m):
    return (v + m - 1) // m * m


@functools.partial(jax.jit, static_argnames=("num_graphs", "tile_m"))
def graphsage_forward(x, edge_index, batch, params, num_graphs, tile_m=256):
    """x: (N, F) f32; edge_index: (2, E) int32 (src, dst); batch: (N,) int32.

    tile_m: 256 fills the v6e/v7x 256x256 MXU; use 128 on v5e.
    """
    N, F = x.shape
    H = params["wl"].shape[1]

    TM = tile_m
    N_pad = _round_up(max(N, TM), TM)
    Fp = _round_up(max(F, LANE), LANE)
    Hp = _round_up(max(H, LANE), LANE)
    Gp = _round_up(max(num_graphs, SUBLANE), SUBLANE)
    n_tiles = N_pad // TM

    # --- glue (all O(N + E)) ---------------------------------------------------
    # preprocess_features: row-normalize with inf -> 0 (done here in XLA, not in
    # the kernel, so the kernel keeps a single resident feature copy).
    rs = jnp.sum(x, axis=1, keepdims=True)
    x_norm = x * jnp.where(rs == 0.0, 0.0, 1.0 / rs)

    src = edge_index[0].astype(jnp.int32)
    dst = edge_index[1].astype(jnp.int32)
    order = jnp.argsort(dst)
    col_ids = src[order]                      # neighbor (source) ids, dst-sorted
    deg = jnp.zeros((N_pad,), jnp.int32).at[dst].add(1)
    indptr = jnp.concatenate(
        [jnp.zeros((1,), jnp.int32), jnp.cumsum(deg, dtype=jnp.int32)])

    deg_f = deg.astype(jnp.float32)[:, None]                       # (N_pad, 1)
    inv_deg = jnp.where(deg_f > 0.0, 1.0 / jnp.maximum(deg_f, 1.0), 0.0)

    x_pad = jnp.zeros((N_pad, Fp), jnp.float32).at[:N, :F].set(x_norm)
    # padded nodes get graph id Gp (matches no pooling row -> excluded)
    batch_pad = jnp.full((1, N_pad), Gp, jnp.int32).at[0, :N].set(
        batch.astype(jnp.int32))

    def pad2(w, r, c, dt):
        return jnp.zeros((r, c), dt).at[:w.shape[0], :w.shape[1]].set(w.astype(dt))

    wl = pad2(params["wl"], Fp, Hp, jnp.bfloat16)
    wr = pad2(params["wr"], Fp, Hp, jnp.bfloat16)
    w1h = pad2(params["w1h"], Hp, Hp, jnp.bfloat16)
    w1x = pad2(params["w1x"], Fp, Hp, jnp.bfloat16)
    w3 = pad2(params["w3"], Hp, Hp, jnp.float32)
    b1 = jnp.zeros((1, Hp), jnp.float32).at[0, :H].set(params["b1"])
    b3 = jnp.zeros((1, Hp), jnp.float32).at[0, :H].set(params["b3"])

    def const(shape):
        return pl.BlockSpec(shape, lambda i, *_: (0,) * len(shape))

    # rough VMEM budget: scratch + double-buffered pipelined blocks + slack,
    # clamped to the physical per-core VMEM of whatever chip we are on.
    vmem_est = (N_pad * Fp * 4                       # resident features (scratch)
                + TM * Fp * 4 + Gp * Hp * 4          # agg + pooled scratch
                + 2 * Gp * Hp * 4                    # output block
                + 2 * (TM * 4 + TM * 4)              # inv_deg + batch tiles
                + 2 * (3 * Fp * Hp + Hp * Hp) * 2    # bf16 weights (wl, wr, w1x, w1h)
                + 2 * (Hp * Hp * 4 + 2 * Hp * 4)     # w3 + biases
                + (8 << 20))
    try:
        vmem_cap = int(pltpu.get_tpu_info().vmem_capacity_bytes)
    except Exception:
        vmem_cap = 64 << 20                          # conservative (v7x-sized)
    vmem_limit = int(min(max(vmem_est, 32 << 20), vmem_cap - (8 << 20)))

    out_pad = pl.pallas_call(
        graphsage_kernel,
        out_shape=jax.ShapeDtypeStruct((Gp, Hp), jnp.float32),
        grid_spec=pltpu.PrefetchScalarGridSpec(
            num_scalar_prefetch=2,                    # indptr, col_ids (SMEM)
            grid=(n_tiles,),
            in_specs=[
                pl.BlockSpec(memory_space=pl.ANY),                # x (HBM; DMA'd once)
                pl.BlockSpec((TM, 1), lambda i, *_: (i, 0)),      # 1/deg per node
                pl.BlockSpec((1, TM), lambda i, *_: (0, i)),      # batch ids per tile
                const((Fp, Hp)), const((Fp, Hp)),                 # wl, wr (bf16)
                const((Hp, Hp)), const((Fp, Hp)),                 # w1h, w1x (bf16)
                const((1, Hp)),                                   # b1
                const((Hp, Hp)), const((1, Hp)),                  # w3, b3
            ],
            out_specs=const((Gp, Hp)),
            scratch_shapes=[
                pltpu.VMEM((N_pad, Fp), jnp.float32),   # resident normalized features
                pltpu.VMEM((TM, Fp), jnp.float32),      # per-tile neighbor means
                pltpu.VMEM((Gp, Hp), jnp.float32),      # global_add_pool accumulator
            ],
        ),
        compiler_params=pltpu.CompilerParams(
            # node-tile axis must be sequential: the pooled accumulator and the
            # fc3 + L2norm finalize live across node tiles.
            dimension_semantics=("arbitrary",),
            vmem_limit_bytes=vmem_limit,
        ),
    )(indptr, col_ids,
      x_pad, inv_deg, batch_pad, wl, wr, w1h, w1x, b1, w3, b3)

    return out_pad[:num_graphs, :H]


# ----------------------------- reference & init --------------------------------
def _bf16(a):
    return a.astype(jnp.bfloat16).astype(jnp.float32)


def graphsage_reference(x, edge_index, batch, params, num_graphs):
    """Pure-JAX reference (same bf16 rounding points as the kernel)."""
    N, _ = x.shape
    rs = jnp.sum(x, axis=1, keepdims=True)
    xn = x * jnp.where(rs == 0.0, 0.0, 1.0 / rs)

    src, dst = edge_index[0], edge_index[1]
    nsum = jnp.zeros_like(xn).at[dst].add(xn[src])
    deg = jnp.zeros((N,), jnp.float32).at[dst].add(1.0)[:, None]
    agg = nsum * jnp.where(deg > 0.0, 1.0 / jnp.maximum(deg, 1.0), 0.0)

    h = _bf16(agg) @ _bf16(params["wl"]) + _bf16(xn) @ _bf16(params["wr"])
    h = _leaky_relu(_l2_normalize_rows(h))
    z = (_bf16(h) @ _bf16(params["w1h"]) + _bf16(xn) @ _bf16(params["w1x"])
         + params["b1"][None, :])
    z = _leaky_relu(z)
    pooled = jnp.zeros((num_graphs, z.shape[1]), jnp.float32).at[batch].add(z)
    o = _leaky_relu(jnp.dot(pooled, params["w3"], precision="highest")
                    + params["b3"][None, :])
    return _l2_normalize_rows(o)


def _xavier_uniform(key, fan_in, fan_out):
    bound = jnp.sqrt(6.0 / (fan_in + fan_out))
    return jax.random.uniform(key, (fan_in, fan_out), jnp.float32, -bound, bound)


def init_params(key, input_size, hidden_size):
    ks = jax.random.split(key, 8)
    F, H = input_size, hidden_size
    wl = _xavier_uniform(ks[0], F, H)            # SAGEConv lin_l (stored (in,out))
    wr = _xavier_uniform(ks[1], F, H)            # SAGEConv lin_r
    lim1 = 1.0 / jnp.sqrt(H + F)                 # fc1: Linear(H+F -> H) split h/x
    w1h = jax.random.uniform(ks[2], (H, H), jnp.float32, -lim1, lim1)
    w1x = jax.random.uniform(ks[3], (F, H), jnp.float32, -lim1, lim1)
    b1 = jax.random.uniform(ks[4], (H,), jnp.float32, -lim1, lim1)
    lim3 = 1.0 / jnp.sqrt(H)                     # fc3: Linear(H -> H)
    w3 = jax.random.uniform(ks[5], (H, H), jnp.float32, -lim3, lim3)
    b3 = jax.random.uniform(ks[6], (H,), jnp.float32, -lim3, lim3)
    return {"wl": wl, "wr": wr, "w1h": w1h, "w1x": w1x, "b1": b1,
            "w3": w3, "b3": b3}


if __name__ == "__main__":
    key = jax.random.PRNGKey(0)
    k_x, k_e1, k_e2, k_p = jax.random.split(key, 4)

    # small but multi-tile: 300 nodes -> 2 node tiles of 256 after padding
    N, F, H, G, E = 300, 8, 32, 3, 1200

    x = jax.random.uniform(k_x, (N, F), jnp.float32)
    src = jax.random.randint(k_e1, (E,), 0, N, jnp.int32)
    dst = jax.random.randint(k_e2, (E,), 0, N, jnp.int32)
    edge_index = jnp.stack([src, dst], axis=0)
    batch = jnp.minimum(jnp.arange(N, dtype=jnp.int32) * G // N, G - 1).astype(jnp.int32)

    params = init_params(k_p, F, H)

    out = graphsage_forward(x, edge_index, batch, params, num_graphs=G)
    out = jax.block_until_ready(out)

    ref = graphsage_reference(x, edge_index, batch, params, G)

    assert out.shape == (G, H)
    assert bool(jnp.all(jnp.isfinite(out)))
    assert bool(jnp.allclose(out, ref, atol=1e-2, rtol=1e-2)), \
        float(jnp.max(jnp.abs(out - ref)))
    print("KERNEL_OK")
</pallas_src>

<mosaic_0001>
module attributes {stable_mosaic.version = 11 : i64} {
  func.func private @main(%arg0: i32) attributes {dimension_semantics = [#tpu.dimension_semantics<core_parallel>], iteration_bounds = array<i64: 2>, tpu.core_type = #tpu.core_type<sc_scalar_subcore>, window_params = []} {
    return
  }
}

module attributes {stable_mosaic.version = 11 : i64} {
  func.func private @main(%arg0: i32) attributes {dimension_semantics = [#tpu.dimension_semantics<core_parallel>], iteration_bounds = array<i64: 2>, tpu.core_type = #tpu.core_type<sc_scalar_subcore>, window_params = []} {
    return
  }
}

module attributes {stable_mosaic.version = 11 : i64} {
  func.func @graphsage_kernel(%arg0: i32, %arg1: memref<513xi32, #tpu.memory_space<smem>>, %arg2: memref<1200xi32, #tpu.memory_space<smem>>, %arg3: memref<512x128xf32, #tpu.memory_space<any>>, %arg4: memref<256x1xf32, #tpu.memory_space<vmem>>, %arg5: memref<1x256xi32, #tpu.memory_space<vmem>>, %arg6: memref<128x128xbf16, #tpu.memory_space<vmem>>, %arg7: memref<128x128xbf16, #tpu.memory_space<vmem>>, %arg8: memref<128x128xbf16, #tpu.memory_space<vmem>>, %arg9: memref<128x128xbf16, #tpu.memory_space<vmem>>, %arg10: memref<1x128xf32, #tpu.memory_space<vmem>>, %arg11: memref<128x128xf32, #tpu.memory_space<vmem>>, %arg12: memref<1x128xf32, #tpu.memory_space<vmem>>, %arg13: memref<8x128xf32, #tpu.memory_space<vmem>>, %arg14: memref<512x128xf32, #tpu.memory_space<vmem>>, %arg15: memref<256x128xf32, #tpu.memory_space<vmem>>, %arg16: memref<8x128xf32, #tpu.memory_space<vmem>>) attributes {dimension_semantics = [#tpu.dimension_semantics<arbitrary>], iteration_bounds = array<i64: 2>, scalar_prefetch = 2 : i64, scratch_operands = 3 : i64, tpu.core_type = #tpu.core_type<tc>, window_params = [{}, {transform_indices = @transform_1, window_bounds = array<i64: 256, 1>}, {transform_indices = @transform_2, window_bounds = array<i64: 1, 256>}, {pipeline_mode = #tpu.pipeline_mode<synchronous>, transform_indices = @transform_3, window_bounds = array<i64: 128, 128>}, {pipeline_mode = #tpu.pipeline_mode<synchronous>, transform_indices = @transform_4, window_bounds = array<i64: 128, 128>}, {pipeline_mode = #tpu.pipeline_mode<synchronous>, transform_indices = @transform_5, window_bounds = array<i64: 128, 128>}, {pipeline_mode = #tpu.pipeline_mode<synchronous>, transform_indices = @transform_6, window_bounds = array<i64: 128, 128>}, {pipeline_mode = #tpu.pipeline_mode<synchronous>, transform_indices = @transform_7, window_bounds = array<i64: 1, 128>}, {pipeline_mode = #tpu.pipeline_mode<synchronous>, transform_indices = @transform_8, window_bounds = array<i64: 128, 128>}, {pipeline_mode = #tpu.pipeline_mode<synchronous>, transform_indices = @transform_9, window_bounds = array<i64: 1, 128>}, {pipeline_mode = #tpu.pipeline_mode<synchronous>, transform_indices = @transform_10, window_bounds = array<i64: 8, 128>}]} {
    %c256_i32 = arith.constant 256 : i32
    %0 = arith.muli %arg0, %c256_i32 : i32
    %1 = tpu.assume_multiple %0, 256 : i32
    %c0_i32 = arith.constant 0 : i32
    %2 = arith.cmpi eq, %arg0, %c0_i32 : i32
    %3 = arith.extui %2 : i1 to i32
    %c0_i32_0 = arith.constant 0 : i32
    %4 = arith.cmpi ne, %3, %c0_i32_0 : i32
    scf.if %4 {
      "tpu.region"() ({
        %63 = tpu.sem_alloc : memref<!tpu.dma_semaphore, #tpu.memory_space<semaphore_mem>>
        tpu.enqueue_dma source(%arg3 : memref<512x128xf32, #tpu.memory_space<any>>) target(%arg14 : memref<512x128xf32, #tpu.memory_space<vmem>>) target_semaphore(%63 : memref<!tpu.dma_semaphore, #tpu.memory_space<semaphore_mem>>)
        tpu.wait_dma2 semaphore(%63 : memref<!tpu.dma_semaphore, #tpu.memory_space<semaphore_mem>>) src(%arg3 : memref<512x128xf32, #tpu.memory_space<any>>) dst(%arg14 : memref<512x128xf32, #tpu.memory_space<vmem>>)
        tpu.yield
      }) : () -> ()
      %cst_37 = arith.constant 0.000000e+00 : f32
      %61 = vector.broadcast %cst_37 : f32 to vector<8x128xf32>
      %c0_38 = arith.constant 0 : index
      %c0_39 = arith.constant 0 : index
      %62 = vector.load %arg16[%c0_38, %c0_39] : memref<8x128xf32, #tpu.memory_space<vmem>>, vector<8x128xf32>
      tpu.vector_store %arg16[%c0_38, %c0_39], %61 {strides = array<i32>} : memref<8x128xf32, #tpu.memory_space<vmem>>, vector<8x128xf32>,
    } else {
    }
    %c0_i32_1 = arith.constant 0 : i32
    %c256_i32_2 = arith.constant 256 : i32
    %5 = arith.addi %c0_i32_1, %c256_i32_2 : i32
    %c1_i32 = arith.constant 1 : i32
    scf.for %arg17 = %c0_i32_1 to %5 step %c1_i32  : i32 {
      %61 = arith.addi %1, %arg17 : i32
      %62 = arith.index_cast %61 : i32 to index
      %63 = memref.load %arg1[%62] : memref<513xi32, #tpu.memory_space<smem>>
      %64 = arith.addi %1, %arg17 : i32
      %c1_i32_37 = arith.constant 1 : i32
      %65 = arith.addi %64, %c1_i32_37 : i32
      %66 = arith.index_cast %65 : i32 to index
      %67 = memref.load %arg1[%66] : memref<513xi32, #tpu.memory_space<smem>>
      %cst_38 = arith.constant 0.000000e+00 : f32
      %68 = vector.broadcast %cst_38 : f32 to vector<1x128xf32>
      %69 = arith.subi %67, %63 : i32
      %70 = arith.addi %63, %69 : i32
      %c1_i32_39 = arith.constant 1 : i32
      %71 = scf.for %arg18 = %63 to %70 step %c1_i32_39 iter_args(%arg19 = %68) -> (vector<1x128xf32>)  : i32 {
        %74 = arith.index_cast %arg18 : i32 to index
        %75 = memref.load %arg2[%74] : memref<1200xi32, #tpu.memory_space<smem>>
        %76 = arith.index_cast %75 : i32 to index
        %c0_41 = arith.constant 0 : index
        %77 = vector.load %arg14[%76, %c0_41] : memref<512x128xf32, #tpu.memory_space<vmem>>, vector<1x128xf32>
        %78 = arith.addf %arg19, %77 : vector<1x128xf32>
        scf.yield %78 : vector<1x128xf32>
      }
      %72 = arith.index_cast %arg17 : i32 to index
      %c0_40 = arith.constant 0 : index
      %73 = vector.load %arg15[%72, %c0_40] : memref<256x128xf32, #tpu.memory_space<vmem>>, vector<1x128xf32>
      tpu.vector_store %arg15[%72, %c0_40], %71 {strides = array<i32>} : memref<256x128xf32, #tpu.memory_space<vmem>>, vector<1x128xf32>,
    }
    %c256_i32_3 = arith.constant 256 : i32
    %c0 = arith.constant 0 : index
    %c0_4 = arith.constant 0 : index
    %6 = vector.load %arg15[%c0, %c0_4] : memref<256x128xf32, #tpu.memory_space<vmem>>, vector<256x128xf32>
    %c0_5 = arith.constant 0 : index
    %c0_6 = arith.constant 0 : index
    %7 = vector.load %arg4[%c0_5, %c0_6] : memref<256x1xf32, #tpu.memory_space<vmem>>, vector<256x1xf32>
    %8 = vector.broadcast %7 : vector<256x1xf32> to vector<256x128xf32>
    %9 = arith.mulf %6, %8 : vector<256x128xf32>
    %10 = arith.index_cast %1 : i32 to index
    %c0_7 = arith.constant 0 : index
    %11 = vector.load %arg14[%10, %c0_7] : memref<512x128xf32, #tpu.memory_space<vmem>>, vector<256x128xf32>
    %12 = arith.truncf %11 : vector<256x128xf32> to vector<256x128xbf16>
    %13 = arith.truncf %9 : vector<256x128xf32> to vector<256x128xbf16>
    %c0_8 = arith.constant 0 : index
    %c0_9 = arith.constant 0 : index
    %14 = vector.load %arg6[%c0_8, %c0_9] : memref<128x128xbf16, #tpu.memory_space<vmem>>, vector<128x128xbf16>
    %cst = arith.constant dense<0.000000e+00> : vector<256x128xf32>
    %15 = tpu.matmul %13, %14, %cst {dimension_numbers = #tpu.dot_dimension_numbers<[1], [0], [0], [1], [0, 0, 1, 1], [], []>} : vector<256x128xbf16>, vector<128x128xbf16>, vector<256x128xf32> -> vector<256x128xf32>
    %c0_10 = arith.constant 0 : index
    %c0_11 = arith.constant 0 : index
    %16 = vector.load %arg7[%c0_10, %c0_11] : memref<128x128xbf16, #tpu.memory_space<vmem>>, vector<128x128xbf16>
    %cst_12 = arith.constant dense<0.000000e+00> : vector<256x128xf32>
    %17 = tpu.matmul %12, %16, %cst_12 {dimension_numbers = #tpu.dot_dimension_numbers<[1], [0], [0], [1], [0, 0, 1, 1], [], []>} : vector<256x128xbf16>, vector<128x128xbf16>, vector<256x128xf32> -> vector<256x128xf32>
    %18 = arith.addf %15, %17 : vector<256x128xf32>
    %19 = arith.mulf %18, %18 : vector<256x128xf32>
    %cst_13 = arith.constant dense<0.000000e+00> : vector<256xf32>
    %20 = vector.multi_reduction <add>, %19, %cst_13 [1] : vector<256x128xf32> to vector<256xf32>
    %21 = vector.shape_cast %20 : vector<256xf32> to vector<256x1xf32>
    %cst_14 = arith.constant 1.000000e-24 : f32
    %22 = vector.broadcast %cst_14 : f32 to vector<256x1xf32>
    %23 = arith.cmpf ogt, %21, %22 : vector<256x1xf32>
    %24 = math.rsqrt %21 : vector<256x1xf32>
    %cst_15 = arith.constant 9.99999995E+11 : f32
    %25 = vector.broadcast %cst_15 : f32 to vector<256x1xf32>
    %26 = arith.select %23, %24, %25 : vector<256x1xi1>, vector<256x1xf32>
    %27 = vector.broadcast %26 : vector<256x1xf32> to vector<256x128xf32>
    %28 = arith.mulf %18, %27 : vector<256x128xf32>
    %cst_16 = arith.constant 0.000000e+00 : f32
    %29 = vector.broadcast %cst_16 : f32 to vector<256x128xf32>
    %30 = arith.cmpf oge, %28, %29 : vector<256x128xf32>
    %cst_17 = arith.constant 0.00999999977 : f32
    %31 = vector.broadcast %cst_17 : f32 to vector<256x128xf32>
    %32 = arith.mulf %31, %28 : vector<256x128xf32>
    %33 = arith.select %30, %28, %32 : vector<256x128xi1>, vector<256x128xf32>
    %34 = arith.truncf %33 : vector<256x128xf32> to vector<256x128xbf16>
    %c0_18 = arith.constant 0 : index
    %c0_19 = arith.constant 0 : index
    %35 = vector.load %arg8[%c0_18, %c0_19] : memref<128x128xbf16, #tpu.memory_space<vmem>>, vector<128x128xbf16>
    %cst_20 = arith.constant dense<0.000000e+00> : vector<256x128xf32>
    %36 = tpu.matmul %34, %35, %cst_20 {dimension_numbers = #tpu.dot_dimension_numbers<[1], [0], [0], [1], [0, 0, 1, 1], [], []>} : vector<256x128xbf16>, vector<128x128xbf16>, vector<256x128xf32> -> vector<256x128xf32>
    %c0_21 = arith.constant 0 : index
    %c0_22 = arith.constant 0 : index
    %37 = vector.load %arg9[%c0_21, %c0_22] : memref<128x128xbf16, #tpu.memory_space<vmem>>, vector<128x128xbf16>
    %cst_23 = arith.constant dense<0.000000e+00> : vector<256x128xf32>
    %38 = tpu.matmul %12, %37, %cst_23 {dimension_numbers = #tpu.dot_dimension_numbers<[1], [0], [0], [1], [0, 0, 1, 1], [], []>} : vector<256x128xbf16>, vector<128x128xbf16>, vector<256x128xf32> -> vector<256x128xf32>
    %39 = arith.addf %36, %38 : vector<256x128xf32>
    %c0_24 = arith.constant 0 : index
    %c0_25 = arith.constant 0 : index
    %40 = vector.load %arg10[%c0_24, %c0_25] : memref<1x128xf32, #tpu.memory_space<vmem>>, vector<1x128xf32>
    %41 = vector.broadcast %40 : vector<1x128xf32> to vector<256x128xf32>
    %42 = arith.addf %39, %41 : vector<256x128xf32>
    %cst_26 = arith.constant 0.000000e+00 : f32
    %43 = vector.broadcast %cst_26 : f32 to vector<256x128xf32>
    %44 = arith.cmpf oge, %42, %43 : vector<256x128xf32>
    %cst_27 = arith.constant 0.00999999977 : f32
    %45 = vector.broadcast %cst_27 : f32 to vector<256x128xf32>
    %46 = arith.mulf %45, %42 : vector<256x128xf32>
    %47 = arith.select %44, %42, %46 : vector<256x128xi1>, vector<256x128xf32>
    %48 = tpu.iota {dimensions = array<i32: 0>} : vector<8x256xi32>
    %c0_28 = arith.constant 0 : index
    %c0_29 = arith.constant 0 : index
    %49 = vector.load %arg5[%c0_28, %c0_29] : memref<1x256xi32, #tpu.memory_space<vmem>>, vector<1x256xi32>
    %50 = vector.broadcast %49 : vector<1x256xi32> to vector<8x256xi32>
    %51 = arith.cmpi eq, %48, %50 : vector<8x256xi32>
    %52 = arith.extui %51 : vector<8x256xi1> to vector<8x256xi32>
    %53 = arith.sitofp %52 : vector<8x256xi32> to vector<8x256xf32>
    %c0_30 = arith.constant 0 : index
    %c0_31 = arith.constant 0 : index
    %54 = vector.load %arg16[%c0_30, %c0_31] : memref<8x128xf32, #tpu.memory_space<vmem>>, vector<8x128xf32>
    %cst_32 = arith.constant dense<0.000000e+00> : vector<8x128xf32>
    %55 = tpu.matmul %53, %47, %cst_32 {dimension_numbers = #tpu.dot_dimension_numbers<[1], [0], [0], [1], [0, 0, 1, 1], [], []>} : vector<8x256xf32>, vector<256x128xf32>, vector<8x128xf32> -> vector<8x128xf32>
    %56 = arith.addf %54, %55 : vector<8x128xf32>
    %c0_33 = arith.constant 0 : index
    %c0_34 = arith.constant 0 : index
    %57 = vector.load %arg16[%c0_33, %c0_34] : memref<8x128xf32, #tpu.memory_space<vmem>>, vector<8x128xf32>
    tpu.vector_store %arg16[%c0_33, %c0_34], %56 {strides = array<i32>} : memref<8x128xf32, #tpu.memory_space<vmem>>, vector<8x128xf32>,
    %c1_i32_35 = arith.constant 1 : i32
    %58 = arith.cmpi eq, %arg0, %c1_i32_35 : i32
    %59 = arith.extui %58 : i1 to i32
    %c0_i32_36 = arith.constant 0 : i32
    %60 = arith.cmpi ne, %59, %c0_i32_36 : i32
    scf.if %60 {
      %c0_37 = arith.constant 0 : index
      %c0_38 = arith.constant 0 : index
      %61 = vector.load %arg16[%c0_37, %c0_38] : memref<8x128xf32, #tpu.memory_space<vmem>>, vector<8x128xf32>
      %c0_39 = arith.constant 0 : index
      %c0_40 = arith.constant 0 : index
      %62 = vector.load %arg11[%c0_39, %c0_40] : memref<128x128xf32, #tpu.memory_space<vmem>>, vector<128x128xf32>
      %cst_41 = arith.constant dense<0.000000e+00> : vector<8x128xf32>
      %63 = tpu.matmul %61, %62, %cst_41 {dimension_numbers = #tpu.dot_dimension_numbers<[1], [0], [0], [1], [0, 0, 1, 1], [], []>} : vector<8x128xf32>, vector<128x128xf32>, vector<8x128xf32> -> vector<8x128xf32>
      %c0_42 = arith.constant 0 : index
      %c0_43 = arith.constant 0 : index
      %64 = vector.load %arg12[%c0_42, %c0_43] : memref<1x128xf32, #tpu.memory_space<vmem>>, vector<1x128xf32>
      %65 = vector.broadcast %64 : vector<1x128xf32> to vector<8x128xf32>
      %66 = arith.addf %63, %65 : vector<8x128xf32>
      %cst_44 = arith.constant 0.000000e+00 : f32
      %67 = vector.broadcast %cst_44 : f32 to vector<8x128xf32>
      %68 = arith.cmpf oge, %66, %67 : vector<8x128xf32>
      %cst_45 = arith.constant 0.00999999977 : f32
      %69 = vector.broadcast %cst_45 : f32 to vector<8x128xf32>
      %70 = arith.mulf %69, %66 : vector<8x128xf32>
      %71 = arith.select %68, %66, %70 : vector<8x128xi1>, vector<8x128xf32>
      %72 = arith.mulf %71, %71 : vector<8x128xf32>
      %cst_46 = arith.constant dense<0.000000e+00> : vector<8xf32>
      %73 = vector.multi_reduction <add>, %72, %cst_46 [1] : vector<8x128xf32> to vector<8xf32>
      %74 = vector.shape_cast %73 : vector<8xf32> to vector<8x1xf32>
      %cst_47 = arith.constant 1.000000e-24 : f32
      %75 = vector.broadcast %cst_47 : f32 to vector<8x1xf32>
      %76 = arith.cmpf ogt, %74, %75 : vector<8x1xf32>
      %77 = math.rsqrt %74 : vector<8x1xf32>
      %cst_48 = arith.constant 9.99999995E+11 : f32
      %78 = vector.broadcast %cst_48 : f32 to vector<8x1xf32>
      %79 = arith.select %76, %77, %78 : vector<8x1xi1>, vector<8x1xf32>
      %80 = vector.broadcast %79 : vector<8x1xf32> to vector<8x128xf32>
      %81 = arith.mulf %71, %80 : vector<8x128xf32>
      %c0_49 = arith.constant 0 : index
      %c0_50 = arith.constant 0 : index
      %82 = vector.load %arg13[%c0_49, %c0_50] : memref<8x128xf32, #tpu.memory_space<vmem>>, vector<8x128xf32>
      tpu.vector_store %arg13[%c0_49, %c0_50], %81 {strides = array<i32>} : memref<8x128xf32, #tpu.memory_space<vmem>>, vector<8x128xf32>,
    } else {
    }
    return
  }
  func.func @transform_1(%arg0: i32, %arg1: memref<513xi32, #tpu.memory_space<smem>>, %arg2: memref<1200xi32, #tpu.memory_space<smem>>) -> (i32, i32) {
    %c0_i32 = arith.constant 0 : i32
    %c0_i32_0 = arith.constant 0 : i32
    return %arg0, %c0_i32 : i32, i32
  }
  func.func @transform_2(%arg0: i32, %arg1: memref<513xi32, #tpu.memory_space<smem>>, %arg2: memref<1200xi32, #tpu.memory_space<smem>>) -> (i32, i32) {
    %c0_i32 = arith.constant 0 : i32
    %c0_i32_0 = arith.constant 0 : i32
    return %c0_i32, %arg0 : i32, i32
  }
  func.func @transform_3(%arg0: i32, %arg1: memref<513xi32, #tpu.memory_space<smem>>, %arg2: memref<1200xi32, #tpu.memory_space<smem>>) -> (i32, i32) {
    %c0_i32 = arith.constant 0 : i32
    %c0_i32_0 = arith.constant 0 : i32
    %c0_i32_1 = arith.constant 0 : i32
    return %c0_i32, %c0_i32_0 : i32, i32
  }
  func.func @transform_4(%arg0: i32, %arg1: memref<513xi32, #tpu.memory_space<smem>>, %arg2: memref<1200xi32, #tpu.memory_space<smem>>) -> (i32, i32) {
    %c0_i32 = arith.constant 0 : i32
    %c0_i32_0 = arith.constant 0 : i32
    %c0_i32_1 = arith.constant 0 : i32
    return %c0_i32, %c0_i32_0 : i32, i32
  }
  func.func @transform_5(%arg0: i32, %arg1: memref<513xi32, #tpu.memory_space<smem>>, %arg2: memref<1200xi32, #tpu.memory_space<smem>>) -> (i32, i32) {
    %c0_i32 = arith.constant 0 : i32
    %c0_i32_0 = arith.constant 0 : i32
    %c0_i32_1 = arith.constant 0 : i32
    return %c0_i32, %c0_i32_0 : i32, i32
  }
  func.func @transform_6(%arg0: i32, %arg1: memref<513xi32, #tpu.memory_space<smem>>, %arg2: memref<1200xi32, #tpu.memory_space<smem>>) -> (i32, i32) {
    %c0_i32 = arith.constant 0 : i32
    %c0_i32_0 = arith.constant 0 : i32
    %c0_i32_1 = arith.constant 0 : i32
    return %c0_i32, %c0_i32_0 : i32, i32
  }
  func.func @transform_7(%arg0: i32, %arg1: memref<513xi32, #tpu.memory_space<smem>>, %arg2: memref<1200xi32, #tpu.memory_space<smem>>) -> (i32, i32) {
    %c0_i32 = arith.constant 0 : i32
    %c0_i32_0 = arith.constant 0 : i32
    %c0_i32_1 = arith.constant 0 : i32
    return %c0_i32, %c0_i32_0 : i32, i32
  }
  func.func @transform_8(%arg0: i32, %arg1: memref<513xi32, #tpu.memory_space<smem>>, %arg2: memref<1200xi32, #tpu.memory_space<smem>>) -> (i32, i32) {
    %c0_i32 = arith.constant 0 : i32
    %c0_i32_0 = arith.constant 0 : i32
    %c0_i32_1 = arith.constant 0 : i32
    return %c0_i32, %c0_i32_0 : i32, i32
  }
  func.func @transform_9(%arg0: i32, %arg1: memref<513xi32, #tpu.memory_space<smem>>, %arg2: memref<1200xi32, #tpu.memory_space<smem>>) -> (i32, i32) {
    %c0_i32 = arith.constant 0 : i32
    %c0_i32_0 = arith.constant 0 : i32
    %c0_i32_1 = arith.constant 0 : i32
    return %c0_i32, %c0_i32_0 : i32, i32
  }
  func.func @transform_10(%arg0: i32, %arg1: memref<513xi32, #tpu.memory_space<smem>>, %arg2: memref<1200xi32, #tpu.memory_space<smem>>) -> (i32, i32) {
    %c0_i32 = arith.constant 0 : i32
    %c0_i32_0 = arith.constant 0 : i32
    %c0_i32_1 = arith.constant 0 : i32
    return %c0_i32, %c0_i32_0 : i32, i32
  }
}

</mosaic_0001>

<bundles_post_ra>
// kernel: graphsage_forward.1
= control target key start
LH: loop header
LB: loop body
LE: loop exit
PB: predicated region body
PF: predicated region fallthrough
CT: control target
= control target key end

     0   :  { %s4205_s0 = inlined_call_operand.vmem [shape: s32[513], index: 0, kind: input, shape index: {}]   ;;  %s4206_s2 = inlined_call_operand.vmem [shape: f32[512,128], index: 2, kind: input, shape index: {}]   ;;  %s4207_s3 = inlined_call_operand.vmem [shape: f32[512,1], index: 3, kind: input, shape index: {}]   ;;  %s4208_s4 = inlined_call_operand.vmem [shape: s32[1,512], index: 4, kind: input, shape index: {}]   ;;  %s4209_s5 = inlined_call_operand.vmem [shape: bf16[128,128], index: 5, kind: input, shape index: {}]   ;;  %s4210_s6 = inlined_call_operand.vmem [shape: bf16[128,128], index: 6, kind: input, shape index: {}]   ;;  %s4211_s7 = inlined_call_operand.vmem [shape: bf16[128,128], index: 7, kind: input, shape index: {}]   ;;  %s4212_s8 = inlined_call_operand.vmem [shape: bf16[128,128], index: 8, kind: input, shape index: {}]   ;;  %s4213_s9 = inlined_call_operand.vmem [shape: f32[1,128], index: 9, kind: input, shape index: {}]   ;;  %s4214_s10 = inlined_call_operand.vmem [shape: f32[128,128], index: 10, kind: input, shape index: {}]   ;;  %s4215_s11 = inlined_call_operand.vmem [shape: f32[1,128], index: 11, kind: input, shape index: {}]   ;;  %s4216_s12 = inlined_call_operand.vmem [shape: f32[8,128], index: 12, kind: output, shape index: {}]   ;;  %s4217_s1 = inlined_call_operand.hbm [shape: s32[1200], index: 1, kind: input, shape index: {}]  }
   0x1   :  { %s17_s23 = sshll.u32 %s4205_s0, 4  ;;  %s18_s23 = int_to_ptr.vmem [resolvable:$true] %s17_s23 }
   0x2   :  { %s3197_s24 = scalar_lea.vmem %s18_s23, 80  ;;  %s3201_s25 = scalar_lea.vmem %s18_s23, 128 }
   0x3   :  { %p3198_p0 = scmp.ne.s32.totalorder %s18_s23, %s3197_s24  ;;  %p3202_p1 = scmp.lt.s32.totalorder %s18_s23, %s18_s23 }
   0x4   :  { %p3203_p2 = scmp.lt.s32.totalorder %s3201_s25, %s3197_s24 }
   0x6   :  { %p3204_p3 = por %p3203_p2, %p3202_p1 }
   0x8   :  { %p3205_p4 = pnand %p3204_p3, %p3198_p0 }
   0xa   :  { %3208 = shalt.err (!%p3205_p4)  }
   0xb   :  { %s3263_s26 = smov [#allocation6]   ;;  %s3209_s29 = scalar_lea.hbm %s4217_s1, 160 }
   0xc   :  { %20 = dma.vmem_to_smem %s18_s23, 80, %s3263_s26, [#allocation5] }
   0xd   :  { %p3210_p5 = scmp.ne.s32.totalorder %s4217_s1, %s3209_s29  ;;  %s3211_s15 = scalar_lea.hbm %s4217_s1, 256 }
   0xe   :  { %p3212_p6 = scmp.lt.u32.totalorder %s3211_s15, %s3209_s29  ;;  %p3213_p7 = scmp.lt.u32.totalorder %s3209_s29, %s4217_s1 }
  0x10   :  { %p3214_p8 = por %p3213_p7, %p3212_p6 }
  0x12   :  { %p3215_p9 = pnand %p3214_p8, %p3210_p5 }
  0x14   :  { %3218 = shalt.err (!%p3215_p9)  }
  0x15   :  { %s3264_s18 = smov [#allocation7]  }
  0x16   :  { %22 = dma.hbm_to_smem %s4217_s1, 160, %s3264_s18, [#allocation5] }
  0x17   :  { %3239 = dma.done.wait [#allocation5], 240 }
  0x18   :  { %3240 = vsyncadd [#allocation5], 4294967056 }
  0x19   :  { %24 = sfence }
  0x1a   :  { %s3354_s21 = smov 0  }
  0x1b LB: > { %s3360_s22 = sadd.s32 4294967295, %s3245_s21   ;;  %p2507_p10 = scmp.ge.s32.totalorder %s3245_s21, 1  ;;  %s3245_s21 = sphi %s3354_s21, %s30_s21  }
  0x1c   : > { %p304_p11 = scmp.lt.s32.totalorder %s3245_s21, 3 }
  0x1e   : > { %p305_p12 = pnand %p2507_p10, %p304_p11 }
  0x1f   : > { %s2508_s1 = sshll.u32 (!%p305_p12), %s3360_s22, 5  ;;  %s2510_s23 = sshll.u32 (!%p305_p12), %s3360_s22, 1 }
  0x20   : > { %308 = sbr.rel (%p305_p12) target bundleno = 1527 (0x5f7), region = 56  ;;  %p340_p13 = scmp.lt.s32.totalorder (!%p305_p12), %s2508_s1, 63 }
  0x21   : > { %p346_p0 = scmp.lt.s32.totalorder (!%p305_p12), %s2510_s23, 3  ;;  %s2511_s24 = sshll.u32 (!%p305_p12), %s3360_s22, 8 }
  0x22   : > { %p2512_p1 = scmp.ne.s32.totalorder (!%p305_p12), %s3360_s22, 0 }
  0x27   : > { %s4219_s1 = smov (!%p340_p13, %s2508_s1), 63  ;;  %s4221_s23 = smov (!%p346_p0, %s2510_s23), 3 }
  0x28   : > { %s2509_s25 = sshll.u32 %s4219_s1, 3  ;;  %s348_s13 = scalar_lea.vmem %s4208_s4, %s4221_s23 }
  0x29   : > { %s3372_s28 = scalar_lea.vmem %s4207_s3, %s2509_s25  ;;  %355 = sbr.rel (%p2512_p1) target bundleno = 85 (0x55), region = 60 }
  0x30   : > { %v388_v0 = vld [vmem:[%s4206_s2] sm:$0xff]  ;;  %v390_v1 = vld [vmem:[%s4206_s2 + $0x8] sm:$0xff]  ;;  %v392_v2 = vld [vmem:[%s4206_s2 + $0x10] sm:$0xff] }
  0x31   : > { %389 = vst [vmem:[#allocation2] sm:$0xff] %v388_v0  ;;  %391 = vst [vmem:[#allocation2 + $0x8] sm:$0xff] %v390_v1  ;;  %v394_v3 = vld [vmem:[%s4206_s2 + $0x18] sm:$0xff]  ;;  %v396_v4 = vld [vmem:[%s4206_s2 + $0x20] sm:$0xff] }
  0x32   : > { %393 = vst [vmem:[#allocation2 + $0x10] sm:$0xff] %v392_v2  ;;  %v398_v5 = vld [vmem:[%s4206_s2 + $0x28] sm:$0xff]  ;;  %395 = vst [vmem:[#allocation2 + $0x18] sm:$0xff] %v394_v3  ;;  %v400_v6 = vld [vmem:[%s4206_s2 + $0x30] sm:$0xff] }
  0x33   : > { %397 = vst [vmem:[#allocation2 + $0x20] sm:$0xff] %v396_v4  ;;  %399 = vst [vmem:[#allocation2 + $0x28] sm:$0xff] %v398_v5  ;;  %v402_v7 = vld [vmem:[%s4206_s2 + $0x38] sm:$0xff]  ;;  %v404_v8 = vld [vmem:[%s4206_s2 + $0x40] sm:$0xff] }
  0x34   : > { %401 = vst [vmem:[#allocation2 + $0x30] sm:$0xff] %v400_v6  ;;  %403 = vst [vmem:[#allocation2 + $0x38] sm:$0xff] %v402_v7  ;;  %v406_v9 = vld [vmem:[%s4206_s2 + $0x48] sm:$0xff]  ;;  %v408_v10 = vld [vmem:[%s4206_s2 + $0x50] sm:$0xff] }
  0x35   : > { %405 = vst [vmem:[#allocation2 + $0x40] sm:$0xff] %v404_v8  ;;  %v410_v11 = vld [vmem:[%s4206_s2 + $0x58] sm:$0xff]  ;;  %407 = vst [vmem:[#allocation2 + $0x48] sm:$0xff] %v406_v9  ;;  %v412_v12 = vld [vmem:[%s4206_s2 + $0x60] sm:$0xff] }
  0x36   : > { %409 = vst [vmem:[#allocation2 + $0x50] sm:$0xff] %v408_v10  ;;  %411 = vst [vmem:[#allocation2 + $0x58] sm:$0xff] %v410_v11  ;;  %v414_v13 = vld [vmem:[%s4206_s2 + $0x68] sm:$0xff]  ;;  %v416_v14 = vld [vmem:[%s4206_s2 + $0x70] sm:$0xff] }
  0x37   : > { %413 = vst [vmem:[#allocation2 + $0x60] sm:$0xff] %v412_v12  ;;  %415 = vst [vmem:[#allocation2 + $0x68] sm:$0xff] %v414_v13  ;;  %v418_v15 = vld [vmem:[%s4206_s2 + $0x78] sm:$0xff]  ;;  %v420_v16 = vld [vmem:[%s4206_s2 + $0x80] sm:$0xff] }
  0x38   : > { %417 = vst [vmem:[#allocation2 + $0x70] sm:$0xff] %v416_v14  ;;  %v422_v17 = vld [vmem:[%s4206_s2 + $0x88] sm:$0xff]  ;;  %419 = vst [vmem:[#allocation2 + $0x78] sm:$0xff] %v418_v15  ;;  %v424_v18 = vld [vmem:[%s4206_s2 + $0x90] sm:$0xff] }
  0x39   : > { %421 = vst [vmem:[#allocation2 + $0x80] sm:$0xff] %v420_v16  ;;  %423 = vst [vmem:[#allocation2 + $0x88] sm:$0xff] %v422_v17  ;;  %v426_v19 = vld [vmem:[%s4206_s2 + $0x98] sm:$0xff]  ;;  %v428_v20 = vld [vmem:[%s4206_s2 + $0xa0] sm:$0xff] }
  0x3a   : > { %425 = vst [vmem:[#allocation2 + $0x90] sm:$0xff] %v424_v18  ;;  %427 = vst [vmem:[#allocation2 + $0x98] sm:$0xff] %v426_v19  ;;  %v430_v21 = vld [vmem:[%s4206_s2 + $0xa8] sm:$0xff]  ;;  %v432_v22 = vld [vmem:[%s4206_s2 + $0xb0] sm:$0xff] }
  0x3b   : > { %429 = vst [vmem:[#allocation2 + $0xa0] sm:$0xff] %v428_v20  ;;  %v434_v23 = vld [vmem:[%s4206_s2 + $0xb8] sm:$0xff]  ;;  %431 = vst [vmem:[#allocation2 + $0xa8] sm:$0xff] %v430_v21  ;;  %v436_v24 = vld [vmem:[%s4206_s2 + $0xc0] sm:$0xff] }
  0x3c   : > { %433 = vst [vmem:[#allocation2 + $0xb0] sm:$0xff] %v432_v22  ;;  %435 = vst [vmem:[#allocation2 + $0xb8] sm:$0xff] %v434_v23  ;;  %v438_v25 = vld [vmem:[%s4206_s2 + $0xc8] sm:$0xff]  ;;  %v440_v26 = vld [vmem:[%s4206_s2 + $0xd0] sm:$0xff] }
  0x3d   : > { %437 = vst [vmem:[#allocation2 + $0xc0] sm:$0xff] %v436_v24  ;;  %439 = vst [vmem:[#allocation2 + $0xc8] sm:$0xff] %v438_v25  ;;  %v442_v27 = vld [vmem:[%s4206_s2 + $0xd8] sm:$0xff]  ;;  %v444_v28 = vld [vmem:[%s4206_s2 + $0xe0] sm:$0xff] }
  0x3e   : > { %441 = vst [vmem:[#allocation2 + $0xd0] sm:$0xff] %v440_v26  ;;  %v446_v29 = vld [vmem:[%s4206_s2 + $0xe8] sm:$0xff]  ;;  %443 = vst [vmem:[#allocation2 + $0xd8] sm:$0xff] %v442_v27  ;;  %v448_v30 = vld [vmem:[%s4206_s2 + $0xf0] sm:$0xff] }
  0x3f   : > { %445 = vst [vmem:[#allocation2 + $0xe0] sm:$0xff] %v444_v28  ;;  %447 = vst [vmem:[#allocation2 + $0xe8] sm:$0xff] %v446_v29  ;;  %v450_v31 = vld [vmem:[%s4206_s2 + $0xf8] sm:$0xff]  ;;  %v452_v32 = vld [vmem:[%s4206_s2 + $0x100] sm:$0xff] }
  0x40   : > { %449 = vst [vmem:[#allocation2 + $0xf0] sm:$0xff] %v448_v30  ;;  %451 = vst [vmem:[#allocation2 + $0xf8] sm:$0xff] %v450_v31  ;;  %v454_v33 = vld [vmem:[%s4206_s2 + $0x108] sm:$0xff]  ;;  %v456_v34 = vld [vmem:[%s4206_s2 + $0x110] sm:$0xff] }
  0x41   : > { %453 = vst [vmem:[#allocation2 + $0x100] sm:$0xff] %v452_v32  ;;  %v458_v35 = vld [vmem:[%s4206_s2 + $0x118] sm:$0xff]  ;;  %455 = vst [vmem:[#allocation2 + $0x108] sm:$0xff] %v454_v33  ;;  %v460_v36 = vld [vmem:[%s4206_s2 + $0x120] sm:$0xff] }
  0x42   : > { %457 = vst [vmem:[#allocation2 + $0x110] sm:$0xff] %v456_v34  ;;  %459 = vst [vmem:[#allocation2 + $0x118] sm:$0xff] %v458_v35  ;;  %v462_v37 = vld [vmem:[%s4206_s2 + $0x128] sm:$0xff]  ;;  %v464_v38 = vld [vmem:[%s4206_s2 + $0x130] sm:$0xff] }
  0x43   : > { %461 = vst [vmem:[#allocation2 + $0x120] sm:$0xff] %v460_v36  ;;  %463 = vst [vmem:[#allocation2 + $0x128] sm:$0xff] %v462_v37  ;;  %v466_v39 = vld [vmem:[%s4206_s2 + $0x138] sm:$0xff]  ;;  %v468_v40 = vld [vmem:[%s4206_s2 + $0x140] sm:$0xff] }
  0x44   : > { %465 = vst [vmem:[#allocation2 + $0x130] sm:$0xff] %v464_v38  ;;  %v470_v41 = vld [vmem:[%s4206_s2 + $0x148] sm:$0xff]  ;;  %467 = vst [vmem:[#allocation2 + $0x138] sm:$0xff] %v466_v39  ;;  %v472_v42 = vld [vmem:[%s4206_s2 + $0x150] sm:$0xff] }
  0x45   : > { %469 = vst [vmem:[#allocation2 + $0x140] sm:$0xff] %v468_v40  ;;  %471 = vst [vmem:[#allocation2 + $0x148] sm:$0xff] %v470_v41  ;;  %v474_v43 = vld [vmem:[%s4206_s2 + $0x158] sm:$0xff]  ;;  %v476_v44 = vld [vmem:[%s4206_s2 + $0x160] sm:$0xff] }
  0x46   : > { %473 = vst [vmem:[#allocation2 + $0x150] sm:$0xff] %v472_v42  ;;  %475 = vst [vmem:[#allocation2 + $0x158] sm:$0xff] %v474_v43  ;;  %v478_v45 = vld [vmem:[%s4206_s2 + $0x168] sm:$0xff]  ;;  %v480_v46 = vld [vmem:[%s4206_s2 + $0x170] sm:$0xff] }
  0x47   : > { %477 = vst [vmem:[#allocation2 + $0x160] sm:$0xff] %v476_v44  ;;  %v482_v47 = vld [vmem:[%s4206_s2 + $0x178] sm:$0xff]  ;;  %479 = vst [vmem:[#allocation2 + $0x168] sm:$0xff] %v478_v45  ;;  %v484_v48 = vld [vmem:[%s4206_s2 + $0x180] sm:$0xff] }
  0x48   : > { %481 = vst [vmem:[#allocation2 + $0x170] sm:$0xff] %v480_v46  ;;  %483 = vst [vmem:[#allocation2 + $0x178] sm:$0xff] %v482_v47  ;;  %v486_v49 = vld [vmem:[%s4206_s2 + $0x188] sm:$0xff]  ;;  %v488_v50 = vld [vmem:[%s4206_s2 + $0x190] sm:$0xff] }
  0x49   : > { %485 = vst [vmem:[#allocation2 + $0x180] sm:$0xff] %v484_v48  ;;  %487 = vst [vmem:[#allocation2 + $0x188] sm:$0xff] %v486_v49  ;;  %v490_v51 = vld [vmem:[%s4206_s2 + $0x198] sm:$0xff]  ;;  %v492_v52 = vld [vmem:[%s4206_s2 + $0x1a0] sm:$0xff] }
  0x4a   : > { %489 = vst [vmem:[#allocation2 + $0x190] sm:$0xff] %v488_v50  ;;  %v494_v53 = vld [vmem:[%s4206_s2 + $0x1a8] sm:$0xff]  ;;  %491 = vst [vmem:[#allocation2 + $0x198] sm:$0xff] %v490_v51  ;;  %v496_v54 = vld [vmem:[%s4206_s2 + $0x1b0] sm:$0xff] }
  0x4b   : > { %493 = vst [vmem:[#allocation2 + $0x1a0] sm:$0xff] %v492_v52  ;;  %495 = vst [vmem:[#allocation2 + $0x1a8] sm:$0xff] %v494_v53  ;;  %v498_v55 = vld [vmem:[%s4206_s2 + $0x1b8] sm:$0xff]  ;;  %v500_v56 = vld [vmem:[%s4206_s2 + $0x1c0] sm:$0xff] }
  0x4c   : > { %497 = vst [vmem:[#allocation2 + $0x1b0] sm:$0xff] %v496_v54  ;;  %499 = vst [vmem:[#allocation2 + $0x1b8] sm:$0xff] %v498_v55  ;;  %v502_v57 = vld [vmem:[%s4206_s2 + $0x1c8] sm:$0xff]  ;;  %v504_v58 = vld [vmem:[%s4206_s2 + $0x1d0] sm:$0xff] }
  0x4d   : > { %501 = vst [vmem:[#allocation2 + $0x1c0] sm:$0xff] %v500_v56  ;;  %v506_v59 = vld [vmem:[%s4206_s2 + $0x1d8] sm:$0xff]  ;;  %503 = vst [vmem:[#allocation2 + $0x1c8] sm:$0xff] %v502_v57  ;;  %v508_v60 = vld [vmem:[%s4206_s2 + $0x1e0] sm:$0xff] }
  0x4e   : > { %505 = vst [vmem:[#allocation2 + $0x1d0] sm:$0xff] %v504_v58  ;;  %507 = vst [vmem:[#allocation2 + $0x1d8] sm:$0xff] %v506_v59  ;;  %v510_v61 = vld [vmem:[%s4206_s2 + $0x1e8] sm:$0xff]  ;;  %v512_v62 = vld [vmem:[%s4206_s2 + $0x1f0] sm:$0xff] }
  0x4f   : > { %509 = vst [vmem:[#allocation2 + $0x1e0] sm:$0xff] %v508_v60  ;;  %511 = vst [vmem:[#allocation2 + $0x1e8] sm:$0xff] %v510_v61  ;;  %v514_v63 = vld [vmem:[%s4206_s2 + $0x1f8] sm:$0xff] }
  0x50   : > { %513 = vst [vmem:[#allocation2 + $0x1f0] sm:$0xff] %v512_v62  ;;  %515 = vst [vmem:[#allocation2 + $0x1f8] sm:$0xff] %v514_v63 }
  0x51   : > { %523 = vsyncadd [#allocation8], 8192 }
  0x52   : > { %3241 = dma.done.wait [#allocation8], 8192 }
  0x53   : > { %3242 = vsyncadd [#allocation8], 4294959104  ;;  %v3265_v0 = vmov 0.0  }
  0x54   : > { %527 = vst [vmem:[#allocation4] sm:$0xff] %v3265_v0 }
  0x55 PF: > { %s3571_s15 = smov 0  }
  0x56 LB: >> { %s534_s16 = sadd.s32 %s3249_s15, %s2511_s24  ;;  %v3259_v1 = vmov 0.0   ;;  %s3249_s15 = sphi %s3571_s15, %s533_s15  }
  0x57   : >> { %s535_s17 = sld [smem:[#allocation6 + %s534_s16]]   ;;  %s536_s18 = sadd.s32 1, %s534_s16 }
  0x58   : >> { %s537_s19 = sld [smem:[#allocation6 + %s536_s18]] }
  0x5e   : >> { %p2475_p2 = scmp.ge.s32.totalorder %s535_s17, %s537_s19 }
  0x5f   : >> { %v3251_v2 = vmov (!%p2475_p2), 0.0   ;;  %s3255_s20 = smov (!%p2475_p2), %s535_s17  }
  0x60   : >> { %2477 = sbr.rel (%p2475_p2) target bundleno = 114 (0x72), region = 147 }
  0x67 LB: >>> { %s545_s1 = sld [smem:[#allocation7 + %s3257_s20]]  ;;  %s541_s20 = sadd.s32 1, %s3257_s20   ;;  %s3257_s20 = sphi %s3255_s20, %s541_s20   ;;  %v3253_v2 = vphi %v3251_v2, %v3252_v2  }
  0x68   : >>> { %p540_p3 = scmp.ge.s32.totalorder %s541_s20, %s537_s19 }
  0x6b   : >> { %543 = sbr.rel (!%p540_p3) target bundleno = 103 (0x67), region = 153 }
  0x6d   : >>> { %s546_s25 = scalar_lea.vmem [#allocation2], %s545_s1 }
  0x6e   : >>> { %v547_v3 = vld [vmem:[%s546_s25] sm:$0x1] }
  0x6f   : >>> { %v548_v4 = vadd.f32 %v3253_v2, %v547_v3  }
  0x71   : >>> { %v3252_v2 = vmov %v548_v4   ;;  %v3260_v1 = vmov (%p540_p3), %v548_v4  }
  0x72 PF: >> { %s549_s26 = scalar_lea.vmem [#allocation3], %s3249_s15  ;;  %s533_s15 = sadd.s32 1, %s3249_s15   ;;  %v3261_v1 = vphi %v3259_v1, %v3260_v1  }
  0x73   : >> { %550 = vst [vmem:[%s549_s26] sm:$0x1] %v3261_v1  ;;  %p530_p4 = scmp.ge.s32.totalorder %s533_s15, 256  }
  0x74   : > { %v585_v5 = vld [vmem:[%s3372_s28 + $0x10] sm:$0xff] (%p530_p4)  ;;  %v583_v6 = vld [vmem:[%s3372_s28] sm:$0xff] (%p530_p4)  ;;  %v3266_v7 = vmov (%p530_p4), 0   ;;  %v586_v8 = vld [vmem:[%s3372_s28 + $0x18] sm:$0xff] (%p530_p4)  ;;  %s3607_s18 = scalar_lea.vmem (%p530_p4), [#allocation2], %s2511_s24  ;;  %p2550_p5 = scmp.ne.s32.totalorder (%p530_p4), %s3360_s22, 1 }
  0x75   : > { %532 = sbr.rel (!%p530_p4) target bundleno = 86 (0x56), region = 164  ;;  %3098 = vset.pattern.permute.xlu1 (%p530_p4), %v3266_v7  ;;  %3097 = vset.pattern.permute.xlu0 (%p530_p4), %v3266_v7  ;;  %v584_v9 = vld [vmem:[%s3372_s28 + $0x8] sm:$0xff] (%p530_p4)  ;;  %v587_v11 = vld [vmem:[%s3372_s28 + $0x20] sm:$0xff] (%p530_p4)  ;;  %v590_v14 = vld [vmem:[%s3372_s28 + $0x38] sm:$0xff] (%p530_p4) }
  0x76   : > { %627 = vperm.xlu1 (%p530_p4), %3098, %v585_v5   ;;  %617 = vperm.xlu0 (%p530_p4), %3097, %v583_v6   ;;  %v588_v10 = vld [vmem:[%s3372_s28 + $0x28] sm:$0xff] (%p530_p4)  ;;  %v3099_v12 = vld [vmem:[%s4210_s6] sm:$0xff] (%p530_p4)   ;;  %v589_v15 = vld [vmem:[%s3372_s28 + $0x30] sm:$0xff] (%p530_p4) }
  0x77   : > { %v3100_v13 = vld [vmem:[%s4210_s6 + $0x8] sm:$0xff] (%p530_p4)   ;;  %2702 = vmatprep.subr.bf16.mxu0 (%p530_p4), %v3099_v12  ;;  %v3101_v16 = vld [vmem:[%s4210_s6 + $0x10] sm:$0xff] (%p530_p4)   ;;  %v591_v18 = vld [vmem:[%s3372_s28 + $0x40] sm:$0xff] (%p530_p4) }
  0x78   : > { %2703 = vmatpush3.bf16.msra.mxu0 (%p530_p4), %v3099_v12  ;;  %v592_v17 = vld [vmem:[%s3372_s28 + $0x48] sm:$0xff] (%p530_p4)  ;;  %v3102_v19 = vld [vmem:[%s4210_s6 + $0x18] sm:$0xff] (%p530_p4)   ;;  %v808_v20 = vld [vmem:[%s3607_s18] sm:$0xff] (%p530_p4) }
  0x79   : > { %2704 = vmatprep.subr.bf16.mxu0 (%p530_p4), %v3100_v13  ;;  %v594_v21 = vld [vmem:[%s3372_s28 + $0x58] sm:$0xff] (%p530_p4)  ;;  %v593_v22 = vld [vmem:[%s3372_s28 + $0x50] sm:$0xff] (%p530_p4)  ;;  %v809_v23 = vld [vmem:[%s3607_s18 + $0x8] sm:$0xff] (%p530_p4) }
  0x7a   : > { %632 = vperm.xlu1 (%p530_p4), %3098, %v586_v8   ;;  %622 = vperm.xlu0 (%p530_p4), %3097, %v584_v9   ;;  %v840_v24 = vpack.c.bf16 (%p530_p4), %v809_v23, %v808_v20  ;;  %v3103_v25 = vld [vmem:[%s4210_s6 + $0x20] sm:$0xff] (%p530_p4)   ;;  %v596_v26 = vld [vmem:[%s3372_s28 + $0x68] sm:$0xff] (%p530_p4)  ;;  %v598_v29 = vld [vmem:[%s3372_s28 + $0x78] sm:$0xff] (%p530_p4) }
  0x7b   : > { %v595_v27 = vld [vmem:[%s3372_s28 + $0x60] sm:$0xff] (%p530_p4)  ;;  %v3104_v28 = vld [vmem:[%s4210_s6 + $0x28] sm:$0xff] (%p530_p4)   ;;  %v597_v30 = vld [vmem:[%s3372_s28 + $0x70] sm:$0xff] (%p530_p4) }
  0x7c   : > { %2705 = vmatpush3.bf16.msra.mxu0 %v3100_v13  ;;  %2718 = vmatprep.mubr.bf16.mxu0 %v840_v24  ;;  %v3105_v31 = vld [vmem:[%s4210_s6 + $0x30] sm:$0xff]   ;;  %v600_v32 = vld [vmem:[%s3372_s28 + $0x88] sm:$0xff]  ;;  %v599_v33 = vld [vmem:[%s3372_s28 + $0x80] sm:$0xff] }
  0x7d   : > { %2706 = vmatprep.subr.bf16.mxu0 %v3101_v16  ;;  %2814 = vmatprep.mubr.bf16.mxu1 %v840_v24  ;;  %v3106_v34 = vld [vmem:[%s4210_s6 + $0x38] sm:$0xff]   ;;  %v601_v36 = vld [vmem:[%s3372_s28 + $0x90] sm:$0xff]  ;;  %v812_v39 = vld [vmem:[%s3607_s18 + $0x20] sm:$0xff] }
  0x7e   : > { %642 = vperm.xlu1 %3098, %v588_v10   ;;  %637 = vperm.xlu0 %3097, %v587_v11   ;;  %v602_v35 = vld [vmem:[%s3372_s28 + $0x98] sm:$0xff]  ;;  %v810_v37 = vld [vmem:[%s3607_s18 + $0x10] sm:$0xff]  ;;  %v813_v40 = vld [vmem:[%s3607_s18 + $0x28] sm:$0xff] }
  0x7f   : > { %v811_v38 = vld [vmem:[%s3607_s18 + $0x18] sm:$0xff]  ;;  %v3107_v41 = vld [vmem:[%s4209_s5] sm:$0xff]   ;;  %v604_v42 = vld [vmem:[%s3372_s28 + $0xa8] sm:$0xff]  ;;  %v3644_v45 = vpack.c.bf16 %v813_v40, %v812_v39 }
  0x80   : > { %2707 = vmatpush3.bf16.msra.mxu0 %v3101_v16  ;;  %v603_v43 = vld [vmem:[%s3372_s28 + $0xa0] sm:$0xff]  ;;  %v3642_v44 = vpack.c.bf16 %v811_v38, %v810_v37  ;;  %v3108_v46 = vld [vmem:[%s4209_s5 + $0x8] sm:$0xff]   ;;  %v606_v47 = vld [vmem:[%s3372_s28 + $0xb8] sm:$0xff] }
  0x81   : > { %2708 = vmatprep.subr.bf16.mxu0 %v3102_v19  ;;  %v605_v48 = vld [vmem:[%s3372_s28 + $0xb0] sm:$0xff]  ;;  %v815_v50 = vld [vmem:[%s3607_s18 + $0x38] sm:$0xff]  ;;  %v816_v51 = vld [vmem:[%s3607_s18 + $0x40] sm:$0xff] }
  0x82   : > { %652 = vperm.xlu1 %3098, %v590_v14   ;;  %647 = vperm.xlu0 %3097, %v589_v15   ;;  %v814_v49 = vld [vmem:[%s3607_s18 + $0x30] sm:$0xff]  ;;  %v608_v52 = vld [vmem:[%s3372_s28 + $0xc8] sm:$0xff]  ;;  %v607_v53 = vld [vmem:[%s3372_s28 + $0xc0] sm:$0xff] }
  0x83   : > { %v817_v54 = vld [vmem:[%s3607_s18 + $0x48] sm:$0xff]  ;;  %v3109_v55 = vld [vmem:[%s4209_s5 + $0x10] sm:$0xff]   ;;  %v3662_v56 = vpack.c.bf16 %v815_v50, %v814_v49  ;;  %v610_v58 = vld [vmem:[%s3372_s28 + $0xd8] sm:$0xff] }
  0x84   : > { %2709 = vmatpush3.bf16.msra.mxu0 %v3102_v19  ;;  %v3664_v57 = vpack.c.bf16 %v817_v54, %v816_v51  ;;  %v609_v59 = vld [vmem:[%s3372_s28 + $0xd0] sm:$0xff]  ;;  %v3110_v60 = vld [vmem:[%s4209_s5 + $0x18] sm:$0xff]   ;;  %v820_v63 = vld [vmem:[%s3607_s18 + $0x60] sm:$0xff] }
  0x85   : > { %2710 = vmatprep.subr.bf16.mxu0 %v3103_v25  ;;  %v818_v61 = vld [vmem:[%s3607_s18 + $0x50] sm:$0xff]  ;;  %v819_v62 = vld [vmem:[%s3607_s18 + $0x58] sm:$0xff]  ;;  %v612_v0 = vld [vmem:[%s3372_s28 + $0xe8] sm:$0xff] }
  0x86   : > { %662 = vperm.xlu1 %3098, %v592_v17   ;;  %657 = vperm.xlu0 %3097, %v591_v18   ;;  %v611_v1 = vld [vmem:[%s3372_s28 + $0xe0] sm:$0xff]  ;;  %v821_v2 = vld [vmem:[%s3607_s18 + $0x68] sm:$0xff]  ;;  %v3682_v4 = vpack.c.bf16 %v819_v62, %v818_v61  ;;  %v614_v7 = vld [vmem:[%s3372_s28 + $0xf8] sm:$0xff] }
  0x87   : > { %v3111_v3 = vld [vmem:[%s4209_s5 + $0x20] sm:$0xff]   ;;  %v3684_v5 = vpack.c.bf16 %v821_v2, %v820_v63  ;;  %v3112_v6 = vld [vmem:[%s4209_s5 + $0x28] sm:$0xff]   ;;  %v613_v8 = vld [vmem:[%s3372_s28 + $0xf0] sm:$0xff] }
  0x88   : > { %2711 = vmatpush3.bf16.msra.mxu0 %v3103_v25  ;;  %v822_v9 = vld [vmem:[%s3607_s18 + $0x70] sm:$0xff]  ;;  %v823_v10 = vld [vmem:[%s3607_s18 + $0x78] sm:$0xff]  ;;  %v824_v11 = vld [vmem:[%s3607_s18 + $0x80] sm:$0xff] }
  0x89   : > { %2712 = vmatprep.subr.bf16.mxu0 %v3104_v28  ;;  %v825_v12 = vld [vmem:[%s3607_s18 + $0x88] sm:$0xff]  ;;  %v3113_v13 = vld [vmem:[%s4209_s5 + $0x30] sm:$0xff]   ;;  %v3700_v14 = vpack.c.bf16 %v823_v10, %v822_v9  ;;  %v3114_v16 = vld [vmem:[%s4209_s5 + $0x38] sm:$0xff]  }
  0x8a   : > { %672 = vperm.xlu1 %3098, %v594_v21   ;;  %667 = vperm.xlu0 %3097, %v593_v22   ;;  %v3702_v15 = vpack.c.bf16 %v825_v12, %v824_v11  ;;  %v826_v17 = vld [vmem:[%s3607_s18 + $0x90] sm:$0xff]  ;;  %v827_v18 = vld [vmem:[%s3607_s18 + $0x98] sm:$0xff]  ;;  %v828_v19 = vld [vmem:[%s3607_s18 + $0xa0] sm:$0xff] }
  0x8b   : > { %v829_v20 = vld [vmem:[%s3607_s18 + $0xa8] sm:$0xff]  ;;  %v3713_v21 = vpack.c.bf16 %v827_v18, %v826_v17  ;;  %v830_v23 = vld [vmem:[%s3607_s18 + $0xb0] sm:$0xff]  ;;  %v831_v24 = vld [vmem:[%s3607_s18 + $0xb8] sm:$0xff] }
  0x8c   : > { %2713 = vmatpush3.bf16.msra.mxu0 %v3104_v28  ;;  %v3715_v22 = vpack.c.bf16 %v829_v20, %v828_v19  ;;  %v832_v25 = vld [vmem:[%s3607_s18 + $0xc0] sm:$0xff]  ;;  %v553_v40 = vld [vmem:[#allocation3 + $0x10] sm:$0xff]  ;;  %v558_v62 = vld [vmem:[#allocation3 + $0x38] sm:$0xff] }
  0x8d   : > { %2714 = vmatprep.subr.bf16.mxu0 %v3105_v31  ;;  %v557_v63 = vld [vmem:[#allocation3 + $0x30] sm:$0xff] }
  0x8e   : > { %682 = vperm.xlu1 %3098, %v596_v26   ;;  %677 = vperm.xlu0 %3097, %v595_v27   ;;  %v833_v26 = vld [vmem:[%s3607_s18 + $0xc8] sm:$0xff]  ;;  %v3723_v27 = vpack.c.bf16 %v831_v24, %v830_v23  ;;  %v561_v17 = vld [vmem:[#allocation3 + $0x50] sm:$0xff] }
  0x8f   : > { %v3725_v28 = vpack.c.bf16 %v833_v26, %v832_v25  ;;  %v564_v25 = vld [vmem:[#allocation3 + $0x68] sm:$0xff]  ;;  %v563_v26 = vld [vmem:[#allocation3 + $0x60] sm:$0xff] }
  0x90   : > { %2715 = vmatpush3.bf16.msra.mxu0 %v3105_v31  ;;  %v836_v31 = vld [vmem:[%s3607_s18 + $0xe0] sm:$0xff] }
  0x91   : > { %2716 = vmatprep.subr.bf16.mxu0 %v3106_v34 }
  0x92   : > { %692 = vperm.xlu1 %3098, %v598_v29   ;;  %687 = vperm.xlu0 %3097, %v597_v30   ;;  %v834_v29 = vld [vmem:[%s3607_s18 + $0xd0] sm:$0xff]  ;;  %v835_v30 = vld [vmem:[%s3607_s18 + $0xd8] sm:$0xff] }
  0x94   : > { %2717 = vmatpush3.bf16.msra.mxu0 %v3106_v34 }
  0x95   : > { %2750 = vmatprep.subr.bf16.mxu0 %v3107_v41 }
  0x96   : > { %702 = vperm.xlu1 %3098, %v600_v32   ;;  %697 = vperm.xlu0 %3097, %v599_v33   ;;  %v837_v32 = vld [vmem:[%s3607_s18 + $0xe8] sm:$0xff]  ;;  %v3733_v33 = vpack.c.bf16 %v835_v30, %v834_v29 }
  0x97   : > { %2719 = vmatmul.mubr.bf16.vlgmr.msra.gmra.mrb[0].mxu0 %v3642_v44  ;;  %v3735_v34 = vpack.c.bf16 %v837_v32, %v836_v31 }
  0x98   : > { %2722 = vmatprep.mubr.bf16.mxu0 %v3644_v45  ;;  %2751 = vmatpush3.bf16.msra.mxu0 %v3107_v41  ;;  %v551_v41 = vld [vmem:[#allocation3] sm:$0xff] }
  0x99   : > { %2752 = vmatprep.subr.bf16.mxu0 %v3108_v46 }
  0x9a   : > { %712 = vperm.xlu1 %3098, %v602_v35   ;;  %707 = vperm.xlu0 %3097, %v601_v36   ;;  %v838_v35 = vld [vmem:[%s3607_s18 + $0xf0] sm:$0xff]  ;;  %v839_v36 = vld [vmem:[%s3607_s18 + $0xf8] sm:$0xff] }
  0x9b   : > { %v3741_v37 = vpack.c.bf16 %v839_v36, %v838_v35  ;;  %v566_v36 = vld [vmem:[#allocation3 + $0x78] sm:$0xff] }
  0x9c   : > { %2753 = vmatpush3.bf16.msra.mxu0 %v3108_v46 }
  0x9d   : > { %2754 = vmatprep.subr.bf16.mxu0 %v3109_v55 }
  0x9e   : > { %722 = vperm.xlu1 %3098, %v604_v42   ;;  %717 = vperm.xlu0 %3097, %v603_v43   ;;  %v554_v42 = vld [vmem:[#allocation3 + $0x18] sm:$0xff]  ;;  %v552_v43 = vld [vmem:[#allocation3 + $0x8] sm:$0xff] }
  0x9f   : > { %2723 = vmatmul.mubr.bf16.gmra.mrb[4].mxu0 %v3662_v56 }
  0xa0   : > { %2726 = vmatprep.mubr.bf16.mxu0 %v3664_v57  ;;  %2755 = vmatpush3.bf16.msra.mxu0 %v3109_v55 }
  0xa1   : > { %2756 = vmatprep.subr.bf16.mxu0 %v3110_v60 }
  0xa2   : > { %732 = vperm.xlu1 %3098, %v606_v47   ;;  %727 = vperm.xlu0 %3097, %v605_v48  }
  0xa4   : > { %2757 = vmatpush3.bf16.msra.mxu0 %v3110_v60 }
  0xa5   : > { %2758 = vmatprep.subr.bf16.mxu0 %v3111_v3 }
  0xa6   : > { %742 = vperm.xlu1 %3098, %v608_v52   ;;  %737 = vperm.xlu0 %3097, %v607_v53   ;;  %v556_v52 = vld [vmem:[#allocation3 + $0x28] sm:$0xff]  ;;  %v555_v53 = vld [vmem:[#allocation3 + $0x20] sm:$0xff] }
  0xa7   : > { %2727 = vmatmul.mubr.bf16.gmra.mrb[8].mxu0 %v3682_v4 }
  0xa8   : > { %2730 = vmatprep.mubr.bf16.mxu0 %v3684_v5  ;;  %2759 = vmatpush3.bf16.msra.mxu0 %v3111_v3 }
  0xa9   : > { %2760 = vmatprep.subr.bf16.mxu0 %v3112_v6 }
  0xaa   : > { %752 = vperm.xlu1 %3098, %v610_v58   ;;  %747 = vperm.xlu0 %3097, %v609_v59  }
  0xac   : > { %2761 = vmatpush3.bf16.msra.mxu0 %v3112_v6 }
  0xad   : > { %2762 = vmatprep.subr.bf16.mxu0 %v3113_v13 }
  0xae   : > { %762 = vperm.xlu1 %3098, %v612_v0   ;;  %757 = vperm.xlu0 %3097, %v611_v1  }
  0xaf   : > { %2731 = vmatmul.mubr.bf16.gmra.mrb[12].mxu0 %v3700_v14 }
  0xb0   : > { %2734 = vmatprep.mubr.bf16.mxu0 %v3702_v15  ;;  %2763 = vmatpush3.bf16.msra.mxu0 %v3113_v13 }
  0xb1   : > { %2764 = vmatprep.subr.bf16.mxu0 %v3114_v16 }
  0xb2   : > { %772 = vperm.xlu1 %3098, %v614_v7   ;;  %767 = vperm.xlu0 %3097, %v613_v8   ;;  %v560_v7 = vld [vmem:[#allocation3 + $0x48] sm:$0xff]  ;;  %v559_v8 = vld [vmem:[#allocation3 + $0x40] sm:$0xff] }
  0xb4   : > { %2765 = vmatpush3.bf16.msra.mxu0 %v3114_v16  ;;  %v562_v16 = vld [vmem:[#allocation3 + $0x58] sm:$0xff] }
  0xb7   : > { %2735 = vmatmul.mubr.bf16.gmra.mrb[16].mxu0 %v3713_v21 }
  0xb8   : > { %2738 = vmatprep.mubr.bf16.mxu0 %v3715_v22 }
  0xbf   : > { %2739 = vmatmul.mubr.bf16.gmra.mrb[20].mxu0 %v3723_v27 }
  0xc0   : > { %2742 = vmatprep.mubr.bf16.mxu0 %v3725_v28 }
  0xc7   : > { %2743 = vmatmul.mubr.bf16.gmra.mrb[24].mxu0 %v3733_v33 }
  0xc8   : > { %2746 = vmatprep.mubr.bf16.mxu0 %v3735_v34 }
  0xcf   : > { %2747 = vmatmul.mubr.bf16.gmra.mrb[28].mxu0 %v3741_v37 }
  0xf5   : > { %v628_v38 = vpop.permute.xlu1 %627  ;;  %v618_v39 = vpop.permute.xlu0 %617 }
  0xf6   : > { %v777_v48 = vmul.f32 %v628_v38, %v553_v40  ;;  %v775_v49 = vmul.f32 %v618_v39, %v551_v41  ;;  %v565_v38 = vld [vmem:[#allocation3 + $0x70] sm:$0xff] }
  0xf9   : > { %v633_v46 = vpop.permute.xlu1 %632  ;;  %v623_v47 = vpop.permute.xlu0 %622 }
  0xfa   : > { %v778_v50 = vmul.f32 %v633_v46, %v554_v42  ;;  %v776_v51 = vmul.f32 %v623_v47, %v552_v43  ;;  %v568_v46 = vld [vmem:[#allocation3 + $0x88] sm:$0xff]  ;;  %v567_v47 = vld [vmem:[#allocation3 + $0x80] sm:$0xff] }
  0xfc   : > { %v857_v54 = vpack.c.bf16 %v778_v50, %v777_v48  ;;  %v856_v55 = vpack.c.bf16 %v776_v51, %v775_v49 }
  0xfd   : > { %v643_v58 = vpop.permute.xlu1 %642  ;;  %v638_v59 = vpop.permute.xlu0 %637 }
  0xfe   : > { %v780_v60 = vmul.f32 %v643_v58, %v556_v52  ;;  %v779_v61 = vmul.f32 %v638_v59, %v555_v53  ;;  %2766 = vmatprep.mubr.bf16.mxu0 %v856_v55  ;;  %v570_v53 = vld [vmem:[#allocation3 + $0x98] sm:$0xff] }
  0xff   : > { %2767 = vmatmul.mubr.bf16.vlgmr.msra.gmra.mrb[0].mxu0 %v857_v54  ;;  %v569_v54 = vld [vmem:[#allocation3 + $0x90] sm:$0xff] }
 0x100   : > { %v858_v0 = vpack.c.bf16 %v780_v60, %v779_v61 }
 0x101   : > { %v653_v1 = vpop.permute.xlu1 %652  ;;  %v648_v2 = vpop.permute.xlu0 %647 }
 0x102   : > { %v782_v3 = vmul.f32 %v653_v1, %v558_v62  ;;  %v781_v6 = vmul.f32 %v648_v2, %v557_v63  ;;  %2770 = vmatprep.mubr.bf16.mxu0 %v858_v0  ;;  %v572_v62 = vld [vmem:[#allocation3 + $0xa8] sm:$0xff]  ;;  %v571_v63 = vld [vmem:[#allocation3 + $0xa0] sm:$0xff] }
 0x104   : > { %v859_v9 = vpack.c.bf16 %v782_v3, %v781_v6 }
 0x105   : > { %v663_v10 = vpop.permute.xlu1 %662  ;;  %v658_v11 = vpop.permute.xlu0 %657 }
 0x106   : > { %v784_v12 = vmul.f32 %v663_v10, %v560_v7  ;;  %v783_v13 = vmul.f32 %v658_v11, %v559_v8  ;;  %v574_v7 = vld [vmem:[#allocation3 + $0xb8] sm:$0xff]  ;;  %v573_v8 = vld [vmem:[#allocation3 + $0xb0] sm:$0xff] }
 0x107   : > { %2771 = vmatmul.mubr.bf16.gmra.mrb[4].mxu0 %v859_v9 }
 0x108   : > { %v860_v18 = vpack.c.bf16 %v784_v12, %v783_v13 }
 0x109   : > { %v673_v19 = vpop.permute.xlu1 %672  ;;  %v668_v20 = vpop.permute.xlu0 %667 }
 0x10a   : > { %v786_v23 = vmul.f32 %v673_v19, %v562_v16  ;;  %v785_v24 = vmul.f32 %v668_v20, %v561_v17  ;;  %2774 = vmatprep.mubr.bf16.mxu0 %v860_v18  ;;  %v576_v16 = vld [vmem:[#allocation3 + $0xc8] sm:$0xff]  ;;  %v575_v17 = vld [vmem:[#allocation3 + $0xc0] sm:$0xff] }
 0x10c   : > { %v861_v29 = vpack.c.bf16 %v786_v23, %v785_v24 }
 0x10d   : > { %v683_v30 = vpop.permute.xlu1 %682  ;;  %v678_v31 = vpop.permute.xlu0 %677 }
 0x10e   : > { %v788_v32 = vmul.f32 %v683_v30, %v564_v25  ;;  %v787_v35 = vmul.f32 %v678_v31, %v563_v26  ;;  %v578_v25 = vld [vmem:[#allocation3 + $0xd8] sm:$0xff]  ;;  %v577_v26 = vld [vmem:[#allocation3 + $0xd0] sm:$0xff] }
 0x10f   : > { %2775 = vmatmul.mubr.bf16.gmra.mrb[8].mxu0 %v861_v29 }
 0x110   : > { %v862_v39 = vpack.c.bf16 %v788_v32, %v787_v35 }
 0x111   : > { %v693_v40 = vpop.permute.xlu1 %692  ;;  %v688_v41 = vpop.permute.xlu0 %687 }
 0x112   : > { %v790_v42 = vmul.f32 %v693_v40, %v566_v36  ;;  %v789_v43 = vmul.f32 %v688_v41, %v565_v38  ;;  %2778 = vmatprep.mubr.bf16.mxu0 %v862_v39  ;;  %v580_v36 = vld [vmem:[#allocation3 + $0xe8] sm:$0xff]  ;;  %v579_v38 = vld [vmem:[#allocation3 + $0xe0] sm:$0xff] }
 0x114   : > { %v863_v48 = vpack.c.bf16 %v790_v42, %v789_v43 }
 0x115   : > { %v703_v49 = vpop.permute.xlu1 %702  ;;  %v698_v50 = vpop.permute.xlu0 %697 }
 0x116   : > { %v792_v51 = vmul.f32 %v703_v49, %v568_v46  ;;  %v791_v52 = vmul.f32 %v698_v50, %v567_v47  ;;  %v582_v46 = vld [vmem:[#allocation3 + $0xf8] sm:$0xff]  ;;  %v581_v47 = vld [vmem:[#allocation3 + $0xf0] sm:$0xff] }
 0x117   : > { %2779 = vmatmul.mubr.bf16.gmra.mrb[12].mxu0 %v863_v48 }
 0x118   : > { %v864_v55 = vpack.c.bf16 %v792_v51, %v791_v52 }
 0x119   : > { %v713_v58 = vpop.permute.xlu1 %712  ;;  %v708_v59 = vpop.permute.xlu0 %707 }
 0x11a   : > { %v794_v60 = vmul.f32 %v713_v58, %v570_v53  ;;  %v793_v61 = vmul.f32 %v708_v59, %v569_v54  ;;  %2782 = vmatprep.mubr.bf16.mxu0 %v864_v55  ;;  %v3115_v54 = vld [vmem:[%s4212_s8] sm:$0xff]   ;;  %v3116_v55 = vld [vmem:[%s4212_s8 + $0x8] sm:$0xff]   ;;  %v3117_v58 = vld [vmem:[%s4212_s8 + $0x10] sm:$0xff]  }
 0x11b   : > { %2798 = vmatprep.subr.bf16.mxu1 %v3115_v54  ;;  %v3118_v59 = vld [vmem:[%s4212_s8 + $0x18] sm:$0xff]  }
 0x11c   : > { %v865_v0 = vpack.c.bf16 %v794_v60, %v793_v61  ;;  %2799 = vmatpush3.bf16.msra.mxu1 %v3115_v54  ;;  %v3119_v60 = vld [vmem:[%s4212_s8 + $0x20] sm:$0xff]   ;;  %v3120_v61 = vld [vmem:[%s4212_s8 + $0x28] sm:$0xff]  }
 0x11d   : > { %v723_v1 = vpop.permute.xlu1 %722  ;;  %v718_v2 = vpop.permute.xlu0 %717  ;;  %2800 = vmatprep.subr.bf16.mxu1 %v3116_v55 }
 0x11e   : > { %v796_v3 = vmul.f32 %v723_v1, %v572_v62  ;;  %v795_v6 = vmul.f32 %v718_v2, %v571_v63  ;;  %v3121_v62 = vld [vmem:[%s4212_s8 + $0x30] sm:$0xff]   ;;  %v3122_v63 = vld [vmem:[%s4212_s8 + $0x38] sm:$0xff]   ;;  %v3124_v1 = vld [vmem:[%s4211_s7 + $0x8] sm:$0xff]  }
 0x11f   : > { %2783 = vmatmul.mubr.bf16.gmra.mrb[16].mxu0 %v865_v0  ;;  %v3123_v0 = vld [vmem:[%s4211_s7] sm:$0xff]  }
 0x120   : > { %v866_v9 = vpack.c.bf16 %v796_v3, %v795_v6  ;;  %2801 = vmatpush3.bf16.msra.mxu1 %v3116_v55 }
 0x121   : > { %v733_v10 = vpop.permute.xlu1 %732  ;;  %v728_v11 = vpop.permute.xlu0 %727  ;;  %2802 = vmatprep.subr.bf16.mxu1 %v3117_v58 }
 0x122   : > { %v798_v12 = vmul.f32 %v733_v10, %v574_v7  ;;  %v797_v13 = vmul.f32 %v728_v11, %v573_v8  ;;  %2786 = vmatprep.mubr.bf16.mxu0 %v866_v9 }
 0x124   : > { %v867_v18 = vpack.c.bf16 %v798_v12, %v797_v13  ;;  %2803 = vmatpush3.bf16.msra.mxu1 %v3117_v58 }
 0x125   : > { %v743_v19 = vpop.permute.xlu1 %742  ;;  %v738_v20 = vpop.permute.xlu0 %737  ;;  %2804 = vmatprep.subr.bf16.mxu1 %v3118_v59 }
 0x126   : > { %v800_v23 = vmul.f32 %v743_v19, %v576_v16  ;;  %v799_v24 = vmul.f32 %v738_v20, %v575_v17 }
 0x127   : > { %2787 = vmatmul.mubr.bf16.gmra.mrb[20].mxu0 %v867_v18  ;;  %v3126_v18 = vld [vmem:[%s4211_s7 + $0x18] sm:$0xff]  }
 0x128   : > { %v868_v29 = vpack.c.bf16 %v800_v23, %v799_v24  ;;  %2805 = vmatpush3.bf16.msra.mxu1 %v3118_v59 }
 0x129   : > { %v753_v30 = vpop.permute.xlu1 %752  ;;  %v748_v31 = vpop.permute.xlu0 %747  ;;  %2806 = vmatprep.subr.bf16.mxu1 %v3119_v60 }
 0x12a   : > { %v802_v32 = vmul.f32 %v753_v30, %v578_v25  ;;  %v801_v35 = vmul.f32 %v748_v31, %v577_v26  ;;  %2790 = vmatprep.mubr.bf16.mxu0 %v868_v29  ;;  %v3128_v31 = vld [vmem:[%s4211_s7 + $0x28] sm:$0xff]  }
 0x12c   : > { %v869_v39 = vpack.c.bf16 %v802_v32, %v801_v35  ;;  %2807 = vmatpush3.bf16.msra.mxu1 %v3119_v60 }
 0x12d   : > { %v763_v40 = vpop.permute.xlu1 %762  ;;  %v758_v41 = vpop.permute.xlu0 %757  ;;  %2808 = vmatprep.subr.bf16.mxu1 %v3120_v61 }
 0x12e   : > { %v804_v42 = vmul.f32 %v763_v40, %v580_v36  ;;  %v803_v43 = vmul.f32 %v758_v41, %v579_v38  ;;  %v3129_v40 = vld [vmem:[%s4211_s7 + $0x30] sm:$0xff]  }
 0x12f   : > { %2791 = vmatmul.mubr.bf16.gmra.mrb[24].mxu0 %v869_v39 }
 0x130   : > { %v870_v48 = vpack.c.bf16 %v804_v42, %v803_v43  ;;  %2809 = vmatpush3.bf16.msra.mxu1 %v3120_v61 }
 0x131   : > { %v773_v49 = vpop.permute.xlu1 %772  ;;  %v768_v50 = vpop.permute.xlu0 %767  ;;  %2810 = vmatprep.subr.bf16.mxu1 %v3121_v62 }
 0x132   : > { %v806_v51 = vmul.f32 %v773_v49, %v582_v46  ;;  %v805_v52 = vmul.f32 %v768_v50, %v581_v47  ;;  %2794 = vmatprep.mubr.bf16.mxu0 %v870_v48  ;;  %v3130_v46 = vld [vmem:[%s4211_s7 + $0x38] sm:$0xff]  }
 0x134   : > { %v871_v53 = vpack.c.bf16 %v806_v51, %v805_v52  ;;  %2811 = vmatpush3.bf16.msra.mxu1 %v3121_v62 }
 0x135   : > { %2812 = vmatprep.subr.bf16.mxu1 %v3122_v63 }
 0x137   : > { %2795 = vmatmul.mubr.bf16.gmra.mrb[28].mxu0 %v871_v53 }
 0x138   : > { %2813 = vmatpush3.bf16.msra.mxu1 %v3122_v63 }
 0x139   : > { %2846 = vmatprep.subr.bf16.mxu1 %v3123_v0 }
 0x13b   : > { %2815 = vmatmul.mubr.bf16.vlgmr.msra.gmra.mrb[0].mxu1 %v3642_v44 }
 0x13c   : > { %2818 = vmatprep.mubr.bf16.mxu1 %v3644_v45  ;;  %2847 = vmatpush3.bf16.msra.mxu1 %v3123_v0 }
 0x13d   : > { %2848 = vmatprep.subr.bf16.mxu1 %v3124_v1 }
 0x140   : > { %2849 = vmatpush3.bf16.msra.mxu1 %v3124_v1 }
 0x143   : > { %2819 = vmatmul.mubr.bf16.gmra.mrb[4].mxu1 %v3662_v56 }
 0x144   : > { %2822 = vmatprep.mubr.bf16.mxu1 %v3664_v57 }
 0x14b   : > { %2823 = vmatmul.mubr.bf16.gmra.mrb[8].mxu1 %v3682_v4 }
 0x14c   : > { %2826 = vmatprep.mubr.bf16.mxu1 %v3684_v5 }
 0x153   : > { %2827 = vmatmul.mubr.bf16.gmra.mrb[12].mxu1 %v3700_v14 }
 0x154   : > { %2830 = vmatprep.mubr.bf16.mxu1 %v3702_v15 }
 0x15b   : > { %2831 = vmatmul.mubr.bf16.gmra.mrb[16].mxu1 %v3713_v21 }
 0x15c   : > { %2834 = vmatprep.mubr.bf16.mxu1 %v3715_v22 }
 0x163   : > { %2835 = vmatmul.mubr.bf16.gmra.mrb[20].mxu1 %v3723_v27  ;;  %v3125_v27 = vld [vmem:[%s4211_s7 + $0x10] sm:$0xff]  }
 0x164   : > { %2838 = vmatprep.mubr.bf16.mxu1 %v3725_v28  ;;  %2850 = vmatprep.subr.bf16.mxu1 %v3125_v27 }
 0x165   : > { %2851 = vmatpush3.bf16.msra.mxu1 %v3125_v27 }
 0x166   : > { %2852 = vmatprep.subr.bf16.mxu1 %v3126_v18 }
 0x169   : > { %2853 = vmatpush3.bf16.msra.mxu1 %v3126_v18 }
 0x16b   : > { %2839 = vmatmul.mubr.bf16.gmra.mrb[24].mxu1 %v3733_v33  ;;  %v3127_v33 = vld [vmem:[%s4211_s7 + $0x20] sm:$0xff]  }
 0x16c   : > { %2842 = vmatprep.mubr.bf16.mxu1 %v3735_v34  ;;  %2854 = vmatprep.subr.bf16.mxu1 %v3127_v33 }
 0x16d   : > { %2855 = vmatpush3.bf16.msra.mxu1 %v3127_v33 }
 0x16e   : > { %2856 = vmatprep.subr.bf16.mxu1 %v3128_v31 }
 0x171   : > { %2857 = vmatpush3.bf16.msra.mxu1 %v3128_v31 }
 0x172   : > { %2858 = vmatprep.subr.bf16.mxu1 %v3129_v40 }
 0x173   : > { %2843 = vmatmul.mubr.bf16.gmra.mrb[28].mxu1 %v3741_v37 }
 0x175   : > { %2859 = vmatpush3.bf16.msra.mxu1 %v3129_v40 }
 0x176   : > { %2860 = vmatprep.subr.bf16.mxu1 %v3130_v46 }
 0x179   : > { %2861 = vmatpush3.bf16.msra.mxu1 %v3130_v46 }
 0x1d2   : > { %v3782_v2 = vpop.f32.mrb[0].mxu0 }
 0x1d3   : > { %v3784_v44 = vpop.f32.mrb[1].mxu0  ;;  %v1324_v4 = vmul.f32 %v3782_v2, %v3782_v2 }
 0x1d4   : > { %v3786_v45 = vpop.f32.mrb[2].mxu0  ;;  %v1322_v3 = vmul.f32 %v3784_v44, %v3784_v44 }
 0x1d5   : > { %v3790_v56 = vpop.f32.mrb[3].mxu0  ;;  %v1325_v6 = vmul.f32 %v3786_v45, %v3786_v45 }
 0x1d6   : > { %1354 = vadd.xlane.f32.xlu0 %v1322_v3  ;;  %v1323_v57 = vmul.f32 %v3790_v56, %v3790_v56 }
 0x1d8   : > { %1356 = vadd.xlane.f32.xlu1 %v1323_v57 }
 0x1da   : > { %1358 = vadd.xlane.f32.xlu0 %v1324_v4  ;;  %v3798_v5 = vpop.f32.mrb[4].mxu0 }
 0x1db   : > { %v3800_v14 = vpop.f32.mrb[5].mxu0  ;;  %v1328_v21 = vmul.f32 %v3798_v5, %v3798_v5 }
 0x1dc   : > { %v3802_v15 = vpop.f32.mrb[6].mxu0  ;;  %v1326_v7 = vmul.f32 %v3800_v14, %v3800_v14 }
 0x1dd   : > { %v3808_v8 = vpop.f32.mrb[7].mxu0  ;;  %v1329_v12 = vmul.f32 %v3802_v15, %v3802_v15 }
 0x1de   : > { %1360 = vadd.xlane.f32.xlu0 %v1325_v6  ;;  %1362 = vadd.xlane.f32.xlu1 %v1326_v7  ;;  %v1327_v22 = vmul.f32 %v3808_v8, %v3808_v8 }
 0x1e2   : > { %1366 = vadd.xlane.f32.xlu1 %v1328_v21  ;;  %1364 = vadd.xlane.f32.xlu0 %v1327_v22  ;;  %v3816_v9 = vpop.f32.mrb[8].mxu0 }
 0x1e3   : > { %v3818_v10 = vpop.f32.mrb[9].mxu0  ;;  %v1332_v28 = vmul.f32 %v3816_v9, %v3816_v9 }
 0x1e4   : > { %v3820_v11 = vpop.f32.mrb[10].mxu0  ;;  %v1330_v13 = vmul.f32 %v3818_v10, %v3818_v10 }
 0x1e5   : > { %v3826_v16 = vpop.f32.mrb[11].mxu0  ;;  %v1333_v24 = vmul.f32 %v3820_v11, %v3820_v11 }
 0x1e6   : > { %1368 = vadd.xlane.f32.xlu0 %v1329_v12  ;;  %1370 = vadd.xlane.f32.xlu1 %v1330_v13  ;;  %v1331_v17 = vmul.f32 %v3826_v16, %v3826_v16 }
 0x1ea   : > { %1374 = vadd.xlane.f32.xlu1 %v1332_v28  ;;  %1372 = vadd.xlane.f32.xlu0 %v1331_v17  ;;  %v3839_v19 = vpop.f32.mrb[12].mxu0 }
 0x1eb   : > { %v3841_v20 = vpop.f32.mrb[13].mxu0  ;;  %v1336_v34 = vmul.f32 %v3839_v19, %v3839_v19 }
 0x1ec   : > { %v3844_v23 = vpop.f32.mrb[14].mxu0  ;;  %v1334_v25 = vmul.f32 %v3841_v20, %v3841_v20 }
 0x1ed   : > { %v3850_v26 = vpop.f32.mrb[15].mxu0  ;;  %v1337_v36 = vmul.f32 %v3844_v23, %v3844_v23 }
 0x1ee   : > { %1376 = vadd.xlane.f32.xlu0 %v1333_v24  ;;  %1378 = vadd.xlane.f32.xlu1 %v1334_v25  ;;  %v1335_v29 = vmul.f32 %v3850_v26, %v3850_v26 }
 0x1f2   : > { %1382 = vadd.xlane.f32.xlu1 %v1336_v34  ;;  %1380 = vadd.xlane.f32.xlu0 %v1335_v29  ;;  %v3859_v30 = vpop.f32.mrb[16].mxu0 }
 0x1f3   : > { %v3864_v32 = vpop.f32.mrb[17].mxu0  ;;  %v1340_v37 = vmul.f32 %v3859_v30, %v3859_v30 }
 0x1f4   : > { %v3867_v35 = vpop.f32.mrb[18].mxu0  ;;  %v1338_v38 = vmul.f32 %v3864_v32, %v3864_v32 }
 0x1f5   : > { %v3873_v39 = vpop.f32.mrb[19].mxu0  ;;  %v1341_v48 = vmul.f32 %v3867_v35, %v3867_v35 }
 0x1f6   : > { %1384 = vadd.xlane.f32.xlu0 %v1337_v36  ;;  %1386 = vadd.xlane.f32.xlu1 %v1338_v38  ;;  %v1339_v41 = vmul.f32 %v3873_v39, %v3873_v39 }
 0x1fa   : > { %1390 = vadd.xlane.f32.xlu1 %v1340_v37  ;;  %1388 = vadd.xlane.f32.xlu0 %v1339_v41  ;;  %v3882_v42 = vpop.f32.mrb[20].mxu0 }
 0x1fb   : > { %v3884_v43 = vpop.f32.mrb[21].mxu0  ;;  %v1344_v51 = vmul.f32 %v3882_v42, %v3882_v42 }
 0x1fc   : > { %v3889_v47 = vpop.f32.mrb[22].mxu0  ;;  %v1342_v49 = vmul.f32 %v3884_v43, %v3884_v43 }
 0x1fd   : > { %v3895_v50 = vpop.f32.mrb[23].mxu0  ;;  %v1345_v58 = vmul.f32 %v3889_v47, %v3889_v47 }
 0x1fe   : > { %1392 = vadd.xlane.f32.xlu0 %v1341_v48  ;;  %1394 = vadd.xlane.f32.xlu1 %v1342_v49  ;;  %v1343_v52 = vmul.f32 %v3895_v50, %v3895_v50 }
 0x202   : > { %1398 = vadd.xlane.f32.xlu1 %v1344_v51  ;;  %1396 = vadd.xlane.f32.xlu0 %v1343_v52  ;;  %v3901_v53 = vpop.f32.mrb[24].mxu0 }
 0x203   : > { %v3903_v54 = vpop.f32.mrb[25].mxu0  ;;  %v1348_v61 = vmul.f32 %v3901_v53, %v3901_v53 }
 0x204   : > { %v3905_v55 = vpop.f32.mrb[26].mxu0  ;;  %v1346_v59 = vmul.f32 %v3903_v54, %v3903_v54 }
 0x205   : > { %v3911_v60 = vpop.f32.mrb[27].mxu0  ;;  %v1349_v3 = vmul.f32 %v3905_v55, %v3905_v55 }
 0x206   : > { %1400 = vadd.xlane.f32.xlu0 %v1345_v58  ;;  %1402 = vadd.xlane.f32.xlu1 %v1346_v59  ;;  %v1347_v62 = vmul.f32 %v3911_v60, %v3911_v60 }
 0x20a   : > { %1406 = vadd.xlane.f32.xlu1 %v1348_v61  ;;  %1404 = vadd.xlane.f32.xlu0 %v1347_v62  ;;  %v3917_v63 = vpop.f32.mrb[28].mxu0 }
 0x20b   : > { %v3919_v0 = vpop.f32.mrb[29].mxu0  ;;  %v1352_v6 = vmul.f32 %v3917_v63, %v3917_v63 }
 0x20c   : > { %v3921_v1 = vpop.f32.mrb[30].mxu0  ;;  %v1350_v57 = vmul.f32 %v3919_v0, %v3919_v0 }
 0x20d   : > { %v3927_v4 = vpop.f32.mrb[31].mxu0  ;;  %v1353_v21 = vmul.f32 %v3921_v1, %v3921_v1 }
 0x20e   : > { %1408 = vadd.xlane.f32.xlu0 %v1349_v3  ;;  %1410 = vadd.xlane.f32.xlu1 %v1350_v57  ;;  %v1351_v7 = vmul.f32 %v3927_v4, %v3927_v4 }
 0x212   : > { %1414 = vadd.xlane.f32.xlu1 %v1352_v6  ;;  %1412 = vadd.xlane.f32.xlu0 %v1351_v7 }
 0x216   : > { %1416 = vadd.xlane.f32.xlu0 %v1353_v21 }
 0x263   : > { %v1355_v22 = vpop.xlane.xlu0 %1354 }
 0x264   : > { %3131 = vrsqrt.f32 %v1355_v22  ;;  %vm1418_vm0 = vcmp.gt.f32.partialorder %v1355_v22, 1e-24 }
 0x265   : > { %v1357_v12 = vpop.xlane.xlu1 %1356 }
 0x266   : > { %3133 = vrsqrt.f32 %v1357_v12  ;;  %vm1419_vm1 = vcmp.gt.f32.partialorder %v1357_v12, 1e-24 }
 0x267   : > { %v1359_v13 = vpop.xlane.xlu0 %1358 }
 0x268   : > { %3135 = vrsqrt.f32 %v1359_v13  ;;  %vm1420_vm2 = vcmp.gt.f32.partialorder %v1359_v13, 1e-24 }
 0x26b   : > { %v1361_v27 = vpop.xlane.xlu0 %1360  ;;  %v1363_v28 = vpop.xlane.xlu1 %1362 }
 0x26c   : > { %3137 = vrsqrt.f32 %v1361_v27  ;;  %vm1421_vm5 = vcmp.gt.f32.partialorder %v1361_v27, 1e-24  ;;  %vm1422_vm6 = vcmp.gt.f32.partialorder %v1363_v28, 1e-24 }
 0x26d   : > { %3139 = vrsqrt.f32 %v1363_v28 }
 0x26e   : > { %v3132_v17 = vpop.eup %3131 }
 0x26f   : > { %v1482_v18 = vsel %vm1418_vm0, %v3132_v17, 1e+12  ;;  %v1367_v24 = vpop.xlane.xlu1 %1366  ;;  %v1365_v25 = vpop.xlane.xlu0 %1364 }
 0x270   : > { %v3134_v33 = vpop.eup %3133  ;;  %v1514_v34 = vmul.f32 %v1482_v18, %v3784_v44  ;;  %3141 = vrsqrt.f32 %v1367_v24  ;;  %vm1424_vm9 = vcmp.gt.f32.partialorder %v1367_v24, 1e-24  ;;  %vm1423_vm10 = vcmp.gt.f32.partialorder %v1365_v25, 1e-24 }
 0x271   : > { %v1483_v29 = vsel %vm1419_vm1, %v3134_v33, 1e+12  ;;  %3143 = vrsqrt.f32 %v1365_v25 }
 0x272   : > { %v3136_v31 = vpop.eup %3135  ;;  %v1578_v36 = vmul.f32 0.01, %v1514_v34  ;;  %v1515_v38 = vmul.f32 %v1483_v29, %v3790_v56  ;;  %vm1546_vm3 = vcmp.ge.f32.partialorder %v1514_v34, 0.0 }
 0x273   : > { %v1484_v40 = vsel %vm1420_vm2, %v3136_v31, 1e+12  ;;  %v1369_v37 = vpop.xlane.xlu0 %1368  ;;  %v1371_v41 = vpop.xlane.xlu1 %1370 }
 0x274   : > { %v1579_v46 = vmul.f32 0.01, %v1515_v38  ;;  %v1516_v48 = vmul.f32 %v3782_v2, %v1484_v40  ;;  %3145 = vrsqrt.f32 %v1369_v37  ;;  %vm1547_vm4 = vcmp.ge.f32.partialorder %v1515_v38, 0.0 }
 0x275   : > { %3147 = vrsqrt.f32 %v1371_v41  ;;  %v1610_v49 = vsel %vm1546_vm3, %v1514_v34, %v1578_v36  ;;  %vm1425_vm12 = vcmp.gt.f32.partialorder %v1369_v37, 1e-24  ;;  %vm1426_vm13 = vcmp.gt.f32.partialorder %v1371_v41, 1e-24 }
 0x276   : > { %v3138_v44 = vpop.eup %3137  ;;  %v1611_v51 = vsel %vm1547_vm4, %v1515_v38, %v1579_v46  ;;  %v1580_v58 = vmul.f32 0.01, %v1516_v48  ;;  %vm1548_vm7 = vcmp.ge.f32.partialorder %v1516_v48, 0.0 }
 0x277   : > { %v3140_v52 = vpop.eup %3139  ;;  %v1485_v59 = vsel %vm1421_vm5, %v3138_v44, 1e+12  ;;  %v1375_v56 = vpop.xlane.xlu1 %1374  ;;  %v1642_v62 = vpack.c.bf16 %v1611_v51, %v1610_v49 }
 0x278   : > { %v1373_v61 = vpop.xlane.xlu0 %1372  ;;  %v1517_v3 = vmul.f32 %v3786_v45, %v1485_v59  ;;  %v1486_v57 = vsel %vm1422_vm6, %v3140_v52, 1e+12  ;;  %3149 = vrsqrt.f32 %v1375_v56  ;;  %v1612_v22 = vsel %vm1548_vm7, %v1516_v48, %v1580_v58 }
 0x279   : > { %v1518_v2 = vmul.f32 %v1486_v57, %v3800_v14  ;;  %2862 = vmatprep.mubr.bf16.mxu1 %v1642_v62  ;;  %3151 = vrsqrt.f32 %v1373_v61  ;;  %vm1428_vm1 = vcmp.gt.f32.partialorder %v1375_v56, 1e-24  ;;  %vm1427_vm2 = vcmp.gt.f32.partialorder %v1373_v61, 1e-24 }
 0x27a   : > { %v3142_v6 = vpop.eup %3141  ;;  %vm1549_vm8 = vcmp.ge.f32.partialorder %v1517_v3, 0.0  ;;  %v1581_v7 = vmul.f32 0.01, %v1517_v3 }
 0x27b   : > { %v3144_v21 = vpop.eup %3143  ;;  %v1488_v12 = vsel %vm1424_vm9, %v3142_v6, 1e+12  ;;  %v3940_v27 = vpop.xlane.xlu1 %1378  ;;  %v1582_v17 = vmul.f32 0.01, %v1518_v2  ;;  %vm1550_vm11 = vcmp.ge.f32.partialorder %v1518_v2, 0.0 }
 0x27c   : > { %v1377_v13 = vpop.xlane.xlu0 %1376  ;;  %v1613_v28 = vsel %vm1549_vm8, %v1517_v3, %v1581_v7  ;;  %v1520_v45 = vmul.f32 %v3798_v5, %v1488_v12  ;;  %v1487_v18 = vsel %vm1423_vm10, %v3144_v21, 1e+12  ;;  %vm1430_vm5 = vcmp.gt.f32.partialorder %v3940_v27, 1e-24 }
 0x27d   : > { %v1643_v14 = vpack.c.bf16 %v1613_v28, %v1612_v22  ;;  %v1519_v33 = vmul.f32 %v1487_v18, %v3808_v8  ;;  %3153 = vrsqrt.f32 %v1377_v13  ;;  %v1614_v8 = vsel %vm1550_vm11, %v1518_v2, %v1582_v17 }
 0x27e   : > { %v3146_v34 = vpop.eup %3145  ;;  %v1584_v24 = vmul.f32 0.01, %v1520_v45  ;;  %3155 = vrsqrt.f32 %v3940_v27  ;;  %vm1552_vm15 = vcmp.ge.f32.partialorder %v1520_v45, 0.0  ;;  %vm1429_vm4 = vcmp.gt.f32.partialorder %v1377_v13, 1e-24 }
 0x27f   : > { %v3148_v25 = vpop.eup %3147  ;;  %v1583_v29 = vmul.f32 0.01, %v1519_v33  ;;  %v1489_v31 = vsel %vm1425_vm12, %v3146_v34, 1e+12  ;;  %2863 = vmatmul.mubr.bf16.vlgmr.msra.gmra.mrb[0].mxu1 %v1643_v14  ;;  %v1383_v36 = vpop.xlane.xlu1 %1382  ;;  %vm1551_vm14 = vcmp.ge.f32.partialorder %v1519_v33, 0.0 }
 0x280   : > { %v1381_v38 = vpop.xlane.xlu0 %1380  ;;  %v1521_v5 = vmul.f32 %v3802_v15, %v1489_v31  ;;  %v1490_v40 = vsel %vm1426_vm13, %v3148_v25, 1e+12  ;;  %3157 = vrsqrt.f32 %v1383_v36  ;;  %v1616_v15 = vsel %vm1552_vm15, %v1520_v45, %v1584_v24 }
 0x281   : > { %v1522_v46 = vmul.f32 %v1490_v40, %v3818_v10  ;;  %3159 = vrsqrt.f32 %v1381_v38  ;;  %v1615_v37 = vsel %vm1551_vm14, %v1519_v33, %v1583_v29  ;;  %vm1432_vm6 = vcmp.gt.f32.partialorder %v1383_v36, 1e-24 }
 0x282   : > { %v1585_v41 = vmul.f32 0.01, %v1521_v5  ;;  %v1644_v48 = vpack.c.bf16 %v1615_v37, %v1614_v8  ;;  %vm1553_vm0 = vcmp.ge.f32.partialorder %v1521_v5, 0.0  ;;  %v3150_v44 = vpop.eup %3149  ;;  %vm1431_vm7 = vcmp.gt.f32.partialorder %v1381_v38, 1e-24 }
 0x283   : > { %v3948_v51 = vpop.xlane.xlu1 %1386  ;;  %v3152_v52 = vpop.eup %3151  ;;  %v1492_v58 = vsel %vm1428_vm1, %v3150_v44, 1e+12  ;;  %v1586_v59 = vmul.f32 0.01, %v1522_v46  ;;  %vm1554_vm3 = vcmp.ge.f32.partialorder %v1522_v46, 0.0 }
 0x284   : > { %v1385_v49 = vpop.xlane.xlu0 %1384  ;;  %2866 = vmatprep.mubr.bf16.mxu1 %v1644_v48  ;;  %v1491_v62 = vsel %vm1427_vm2, %v3152_v52, 1e+12  ;;  %v1617_v10 = vsel %vm1553_vm0, %v1521_v5, %v1585_v41  ;;  %v1524_v3 = vmul.f32 %v3816_v9, %v1492_v58  ;;  %vm1434_vm12 = vcmp.gt.f32.partialorder %v3948_v51, 1e-24 }
 0x285   : > { %3161 = vrsqrt.f32 %v1385_v49  ;;  %v1523_v57 = vmul.f32 %v1491_v62, %v3826_v16  ;;  %v1645_v2 = vpack.c.bf16 %v1617_v10, %v1616_v15  ;;  %v1618_v16 = vsel %vm1554_vm3, %v1522_v46, %v1586_v59 }
 0x286   : > { %3163 = vrsqrt.f32 %v3948_v51  ;;  %v1588_v28 = vmul.f32 0.01, %v1524_v3  ;;  %vm1556_vm9 = vcmp.ge.f32.partialorder %v1524_v3, 0.0  ;;  %vm1433_vm11 = vcmp.gt.f32.partialorder %v1385_v49, 1e-24 }
 0x287   : > { %v3154_v56 = vpop.eup %3153  ;;  %v1391_v61 = vpop.xlane.xlu1 %1390  ;;  %v1587_v21 = vmul.f32 0.01, %v1523_v57  ;;  %2867 = vmatmul.mubr.bf16.gmra.mrb[4].mxu1 %v1645_v2  ;;  %vm1555_vm8 = vcmp.ge.f32.partialorder %v1523_v57, 0.0 }
 0x288   : > { %v3954_v6 = vpop.xlane.xlu0 %1388  ;;  %v3156_v7 = vpop.eup %3155  ;;  %v1493_v22 = vsel %vm1429_vm4, %v3154_v56, 1e+12  ;;  %3165 = vrsqrt.f32 %v1391_v61  ;;  %v1620_v36 = vsel %vm1556_vm9, %v1524_v3, %v1588_v28  ;;  %vm1436_vm15 = vcmp.gt.f32.partialorder %v1391_v61, 1e-24 }
 0x289   : > { %v1525_v9 = vmul.f32 %v3820_v11, %v1493_v22  ;;  %v1494_v12 = vsel %vm1430_vm5, %v3156_v7, 1e+12  ;;  %3167 = vrsqrt.f32 %v3954_v6  ;;  %v1619_v14 = vsel %vm1555_vm8, %v1523_v57, %v1587_v21 }
 0x28a   : > { %v3158_v13 = vpop.eup %3157  ;;  %v1526_v27 = vmul.f32 %v1494_v12, %v3841_v20  ;;  %v1646_v24 = vpack.c.bf16 %v1619_v14, %v1618_v16  ;;  %vm1435_vm2 = vcmp.gt.f32.partialorder %v3954_v6, 1e-24 }
 0x28b   : > { %v3160_v17 = vpop.eup %3159  ;;  %v1589_v45 = vmul.f32 0.01, %v1525_v9  ;;  %v1496_v18 = vsel %vm1432_vm6, %v3158_v13, 1e+12  ;;  %v3963_v34 = vpop.xlane.xlu1 %1394  ;;  %vm1557_vm10 = vcmp.ge.f32.partialorder %v1525_v9, 0.0 }
 0x28c   : > { %v3961_v33 = vpop.xlane.xlu0 %1392  ;;  %v1495_v11 = vsel %vm1431_vm7, %v3160_v17, 1e+12  ;;  %v1590_v25 = vmul.f32 0.01, %v1526_v27  ;;  %v1528_v20 = vmul.f32 %v3839_v19, %v1496_v18  ;;  %2870 = vmatprep.mubr.bf16.mxu1 %v1646_v24  ;;  %vm1558_vm13 = vcmp.ge.f32.partialorder %v1526_v27, 0.0 }
 0x28d   : > { %v1527_v29 = vmul.f32 %v1495_v11, %v3850_v26  ;;  %3169 = vrsqrt.f32 %v3961_v33  ;;  %v1621_v5 = vsel %vm1557_vm10, %v1525_v9, %v1589_v45  ;;  %vm1437_vm3 = vcmp.gt.f32.partialorder %v3961_v33, 1e-24 }
 0x28e   : > { %3171 = vrsqrt.f32 %v3963_v34  ;;  %v1647_v46 = vpack.c.bf16 %v1621_v5, %v1620_v36  ;;  %v1592_v48 = vmul.f32 0.01, %v1528_v20  ;;  %v1622_v49 = vsel %vm1558_vm13, %v1526_v27, %v1590_v25 }
 0x28f   : > { %v3162_v31 = vpop.eup %3161  ;;  %v1591_v40 = vmul.f32 0.01, %v1527_v29  ;;  %v1399_v37 = vpop.xlane.xlu1 %1398  ;;  %vm1559_vm14 = vcmp.ge.f32.partialorder %v1527_v29, 0.0  ;;  %vm1560_vm0 = vcmp.ge.f32.partialorder %v1528_v20, 0.0  ;;  %vm1438_vm4 = vcmp.gt.f32.partialorder %v3963_v34, 1e-24 }
 0x290   : > { %v3164_v38 = vpop.eup %3163  ;;  %v1497_v8 = vsel %vm1433_vm11, %v3162_v31, 1e+12  ;;  %v3972_v41 = vpop.xlane.xlu0 %1396  ;;  %3173 = vrsqrt.f32 %v1399_v37  ;;  %2871 = vmatmul.mubr.bf16.gmra.mrb[8].mxu1 %v1647_v46  ;;  %v1624_v56 = vsel %vm1560_vm0, %v1528_v20, %v1592_v48  ;;  %vm1440_vm5 = vcmp.gt.f32.partialorder %v1399_v37, 1e-24 }
 0x291   : > { %v1529_v19 = vmul.f32 %v3844_v23, %v1497_v8  ;;  %v1498_v26 = vsel %vm1434_vm12, %v3164_v38, 1e+12  ;;  %3175 = vrsqrt.f32 %v3972_v41  ;;  %v1623_v15 = vsel %vm1559_vm14, %v1527_v29, %v1591_v40 }
 0x292   : > { %v1530_v44 = vmul.f32 %v1498_v26, %v3864_v32  ;;  %v3166_v52 = vpop.eup %3165  ;;  %v1648_v51 = vpack.c.bf16 %v1623_v15, %v1622_v49  ;;  %vm1439_vm9 = vcmp.gt.f32.partialorder %v3972_v41, 1e-24 }
 0x293   : > { %v1593_v58 = vmul.f32 0.01, %v1529_v19  ;;  %vm1561_vm1 = vcmp.ge.f32.partialorder %v1529_v19, 0.0  ;;  %v3168_v59 = vpop.eup %3167  ;;  %v1500_v23 = vsel %vm1436_vm15, %v3166_v52, 1e+12  ;;  %v3982_v10 = vpop.xlane.xlu1 %1402 }
 0x294   : > { %v1401_v62 = vpop.xlane.xlu0 %1400  ;;  %v1594_v32 = vmul.f32 0.01, %v1530_v44  ;;  %v1532_v3 = vmul.f32 %v3859_v30, %v1500_v23  ;;  %v1499_v57 = vsel %vm1435_vm2, %v3168_v59, 1e+12  ;;  %2874 = vmatprep.mubr.bf16.mxu1 %v1648_v51  ;;  %vm1562_vm6 = vcmp.ge.f32.partialorder %v1530_v44, 0.0 }
 0x295   : > { %3177 = vrsqrt.f32 %v1401_v62  ;;  %v1531_v2 = vmul.f32 %v1499_v57, %v3873_v39  ;;  %v1625_v61 = vsel %vm1561_vm1, %v1529_v19, %v1593_v58  ;;  %vm1441_vm10 = vcmp.gt.f32.partialorder %v1401_v62, 1e-24 }
 0x296   : > { %3179 = vrsqrt.f32 %v3982_v10  ;;  %v1649_v6 = vpack.c.bf16 %v1625_v61, %v1624_v56  ;;  %v1596_v21 = vmul.f32 0.01, %v1532_v3  ;;  %v1626_v16 = vsel %vm1562_vm6, %v1530_v44, %v1594_v32 }
 0x297   : > { %v3170_v7 = vpop.eup %3169  ;;  %v1595_v22 = vmul.f32 0.01, %v1531_v2  ;;  %v1407_v30 = vpop.xlane.xlu1 %1406  ;;  %vm1563_vm7 = vcmp.ge.f32.partialorder %v1531_v2, 0.0  ;;  %vm1564_vm8 = vcmp.ge.f32.partialorder %v1532_v3, 0.0  ;;  %vm1442_vm12 = vcmp.gt.f32.partialorder %v3982_v10, 1e-24 }
 0x298   : > { %v3990_v9 = vpop.xlane.xlu0 %1404  ;;  %v3172_v39 = vpop.eup %3171  ;;  %v1501_v12 = vsel %vm1437_vm3, %v3170_v7, 1e+12  ;;  %3181 = vrsqrt.f32 %v1407_v30  ;;  %2875 = vmatmul.mubr.bf16.gmra.mrb[12].mxu1 %v1649_v6  ;;  %v1628_v20 = vsel %vm1564_vm8, %v1532_v3, %v1596_v21  ;;  %vm1444_vm13 = vcmp.gt.f32.partialorder %v1407_v30, 1e-24 }
 0x299   : > { %v1533_v13 = vmul.f32 %v3867_v35, %v1501_v12  ;;  %v1502_v28 = vsel %vm1438_vm4, %v3172_v39, 1e+12  ;;  %3183 = vrsqrt.f32 %v3990_v9  ;;  %v1627_v27 = vsel %vm1563_vm7, %v1531_v2, %v1595_v22 }
 0x29a   : > { %v3174_v17 = vpop.eup %3173  ;;  %v1534_v45 = vmul.f32 %v1502_v28, %v3884_v43  ;;  %v1650_v18 = vpack.c.bf16 %v1627_v27, %v1626_v16  ;;  %vm1443_vm2 = vcmp.gt.f32.partialorder %v3990_v9, 1e-24 }
 0x29b   : > { %v3176_v14 = vpop.eup %3175  ;;  %v1597_v33 = vmul.f32 0.01, %v1533_v13  ;;  %v1504_v11 = vsel %vm1440_vm5, %v3174_v17, 1e+12  ;;  %v1411_v35 = vpop.xlane.xlu1 %1410  ;;  %vm1565_vm11 = vcmp.ge.f32.partialorder %v1533_v13, 0.0 }
 0x29c   : > { %v1409_v24 = vpop.xlane.xlu0 %1408  ;;  %v1536_v34 = vmul.f32 %v3882_v42, %v1504_v11  ;;  %v1503_v25 = vsel %vm1439_vm9, %v3176_v14, 1e+12  ;;  %2878 = vmatprep.mubr.bf16.mxu1 %v1650_v18  ;;  %v1598_v43 = vmul.f32 0.01, %v1534_v45  ;;  %vm1566_vm14 = vcmp.ge.f32.partialorder %v1534_v45, 0.0 }
 0x29d   : > { %v1535_v29 = vmul.f32 %v1503_v25, %v3895_v50  ;;  %3185 = vrsqrt.f32 %v1409_v24  ;;  %v1629_v31 = vsel %vm1565_vm11, %v1533_v13, %v1597_v33  ;;  %vm1445_vm4 = vcmp.gt.f32.partialorder %v1409_v24, 1e-24 }
 0x29e   : > { %3187 = vrsqrt.f32 %v1411_v35  ;;  %v1651_v5 = vpack.c.bf16 %v1629_v31, %v1628_v20  ;;  %v1600_v37 = vmul.f32 0.01, %v1536_v34  ;;  %v1630_v26 = vsel %vm1566_vm14, %v1534_v45, %v1598_v43 }
 0x29f   : > { %v3178_v36 = vpop.eup %3177  ;;  %v1599_v40 = vmul.f32 0.01, %v1535_v29  ;;  %v1415_v8 = vpop.xlane.xlu1 %1414  ;;  %vm1567_vm15 = vcmp.ge.f32.partialorder %v1535_v29, 0.0  ;;  %vm1568_vm0 = vcmp.ge.f32.partialorder %v1536_v34, 0.0  ;;  %vm1446_vm6 = vcmp.gt.f32.partialorder %v1411_v35, 1e-24 }
 0x2a0   : > { %v3180_v38 = vpop.eup %3179  ;;  %v1505_v42 = vsel %vm1441_vm10, %v3178_v36, 1e+12  ;;  %v1413_v46 = vpop.xlane.xlu0 %1412  ;;  %3189 = vrsqrt.f32 %v1415_v8  ;;  %2879 = vmatmul.mubr.bf16.gmra.mrb[16].mxu1 %v1651_v5  ;;  %vm1448_vm7 = vcmp.gt.f32.partialorder %v1415_v8, 1e-24  ;;  %v2243_v43 = vlaneseq }
 0x2a1   : > { %v1537_v41 = vmul.f32 %v3889_v47, %v1505_v42  ;;  %v1506_v50 = vsel %vm1442_vm12, %v3180_v38, 1e+12  ;;  %3191 = vrsqrt.f32 %v1413_v46  ;;  %v1631_v48 = vsel %vm1567_vm15, %v1535_v29, %v1599_v40  ;;  %v4037_v42 = vld [vmem:[%s4213_s9] ss:$0 sm:$0xff] }
 0x2a2   : > { %v1538_v19 = vmul.f32 %v1506_v50, %v3903_v54  ;;  %v3182_v44 = vpop.eup %3181  ;;  %v1652_v52 = vpack.c.bf16 %v1631_v48, %v1630_v26  ;;  %v1632_v54 = vsel %vm1568_vm0, %v1536_v34, %v1600_v37  ;;  %vm1447_vm8 = vcmp.gt.f32.partialorder %v1413_v46, 1e-24 }
 0x2a3   : > { %v1601_v49 = vmul.f32 0.01, %v1537_v41  ;;  %vm1569_vm1 = vcmp.ge.f32.partialorder %v1537_v41, 0.0  ;;  %v3184_v58 = vpop.eup %3183  ;;  %v1508_v15 = vsel %vm1444_vm13, %v3182_v44, 1e+12  ;;  %v4019_v29 = vshrl.u32 %v2243_v43, 7 }
 0x2a4   : > { %v1417_v47 = vpop.xlane.xlu0 %1416  ;;  %v1602_v59 = vmul.f32 0.01, %v1538_v19  ;;  %v1507_v23 = vsel %vm1443_vm2, %v3184_v58, 1e+12  ;;  %2882 = vmatprep.mubr.bf16.mxu1 %v1652_v52  ;;  %v1540_v51 = vmul.f32 %v3901_v53, %v1508_v15  ;;  %vm1570_vm3 = vcmp.ge.f32.partialorder %v1538_v19, 0.0 }
 0x2a5   : > { %3193 = vrsqrt.f32 %v1417_v47  ;;  %v1539_v62 = vmul.f32 %v1507_v23, %v3911_v60  ;;  %v1633_v10 = vsel %vm1569_vm1, %v1537_v41, %v1601_v49  ;;  %vm1449_vm11 = vcmp.gt.f32.partialorder %v1417_v47, 1e-24 }
 0x2a6   : > { %v1653_v32 = vpack.c.bf16 %v1633_v10, %v1632_v54  ;;  %v1634_v61 = vsel %vm1570_vm3, %v1538_v19, %v1602_v59  ;;  %v1604_v6 = vmul.f32 0.01, %v1540_v51  ;;  %vm1572_vm9 = vcmp.ge.f32.partialorder %v1540_v51, 0.0 }
 0x2a7   : > { %v3186_v3 = vpop.eup %3185  ;;  %v1603_v57 = vmul.f32 0.01, %v1539_v62  ;;  %vm1571_vm5 = vcmp.ge.f32.partialorder %v1539_v62, 0.0  ;;  %v2248_v31 = vsub.s32 0, %v4019_v29  ;;  %v2252_v36 = vsub.s32 1, %v4019_v29 }
 0x2a8   : > { %v3188_v2 = vpop.eup %3187  ;;  %v1509_v56 = vsel %vm1445_vm4, %v3186_v3, 1e+12  ;;  %2883 = vmatmul.mubr.bf16.gmra.mrb[20].mxu1 %v1653_v32  ;;  %v1636_v27 = vsel %vm1572_vm9, %v1540_v51, %v1604_v6  ;;  %v3267_v40 = vmov 1.0  }
 0x2a9   : > { %v1541_v7 = vmul.f32 %v3905_v55, %v1509_v56  ;;  %v1510_v21 = vsel %vm1446_vm6, %v3188_v2, 1e+12  ;;  %v1635_v53 = vsel %vm1571_vm5, %v1539_v62, %v1603_v57 }
 0x2aa   : > { %v3190_v22 = vpop.eup %3189  ;;  %v1542_v60 = vmul.f32 %v1510_v21, %v3919_v0  ;;  %v1654_v30 = vpack.c.bf16 %v1635_v53, %v1634_v61 }
 0x2ab   : > { %v3192_v9 = vpop.eup %3191  ;;  %v1605_v39 = vmul.f32 0.01, %v1541_v7  ;;  %v1512_v12 = vsel %vm1448_vm7, %v3190_v22, 1e+12  ;;  %vm1573_vm10 = vcmp.ge.f32.partialorder %v1541_v7, 0.0 }
 0x2ac   : > { %v1544_v16 = vmul.f32 %v3917_v63, %v1512_v12  ;;  %v1511_v13 = vsel %vm1447_vm8, %v3192_v9, 1e+12  ;;  %2886 = vmatprep.mubr.bf16.mxu1 %v1654_v30  ;;  %v1606_v28 = vmul.f32 0.01, %v1542_v60  ;;  %vm1574_vm12 = vcmp.ge.f32.partialorder %v1542_v60, 0.0 }
 0x2ad   : > { %v1543_v55 = vmul.f32 %v1511_v13, %v3927_v4  ;;  %v1637_v17 = vsel %vm1573_vm10, %v1541_v7, %v1605_v39 }
 0x2ae   : > { %v1655_v18 = vpack.c.bf16 %v1637_v17, %v1636_v27  ;;  %v1608_v33 = vmul.f32 0.01, %v1544_v16  ;;  %vm1576_vm14 = vcmp.ge.f32.partialorder %v1544_v16, 0.0  ;;  %v1638_v63 = vsel %vm1574_vm12, %v1542_v60, %v1606_v28 }
 0x2af   : > { %v3194_v45 = vpop.eup %3193  ;;  %v1607_v0 = vmul.f32 0.01, %v1543_v55  ;;  %vm1575_vm13 = vcmp.ge.f32.partialorder %v1543_v55, 0.0 }
 0x2b0   : > { %v1513_v14 = vsel %vm1449_vm11, %v3194_v45, 1e+12  ;;  %2887 = vmatmul.mubr.bf16.gmra.mrb[24].mxu1 %v1655_v18  ;;  %v1640_v34 = vsel %vm1576_vm14, %v1544_v16, %v1608_v33 }
 0x2b1   : > { %v1545_v11 = vmul.f32 %v3921_v1, %v1513_v14  ;;  %v1639_v24 = vsel %vm1575_vm13, %v1543_v55, %v1607_v0  ;;  %v2245_v1 = vld [vmem:[%s348_s13] sm:$0x3] }
 0x2b2   : > { %v1656_v4 = vpack.c.bf16 %v1639_v24, %v1638_v63  ;;  %v4028_v5 = vrot.slane %v2245_v1, %v2248_v31  ;;  %v2253_v38 = vrot.slane %v2245_v1, %v2252_v36 }
 0x2b3   : > { %vm1577_vm15 = vcmp.ge.f32.partialorder %v1545_v11, 0.0  ;;  %v1609_v35 = vmul.f32 0.01, %v1545_v11 }
 0x2b4   : > { %2890 = vmatprep.mubr.bf16.mxu1 %v1656_v4  ;;  %vm2255_vm0 = vcmp.eq.s32.totalorder %v4019_v29, %v2253_v38  ;;  %vm2254_vm1 = vcmp.eq.s32.totalorder %v4019_v29, %v4028_v5  ;;  %v2340_v29 = vld [vmem:[%s4214_s10 + $0x10] sm:$0xff] (!%p2550_p5)  ;;  %v3268_v5 = vmov (!%p2550_p5), 0.0|0.0  }
 0x2b5   : > { %v1641_v25 = vsel %vm1577_vm15, %v1545_v11, %v1609_v35  ;;  %2548 = vmatprep.mubr.msk.f32.mxu0 %vm2255_vm0, %v3267_v40 }
 0x2b6   : > { %v1657_v20 = vpack.c.bf16 %v1641_v25, %v1640_v34 }
 0x2b8   : > { %2891 = vmatmul.mubr.bf16.gmra.mrb[28].mxu1 %v1657_v20 }
 0x352   : > { %v2864_v8 = vpop.f32.mrb[0].mxu1 }
 0x353   : > { %v2117_v46 = vadd.f32 %v2864_v8, %v4037_v42  ;;  %v1981_v37 = vpop.f32.mrb[1].mxu1 }
 0x354   : > { %v2115_v41 = vadd.f32 %v4037_v42, %v1981_v37  ;;  %v2865_v50 = vpop.f32.mrb[2].mxu1 }
 0x355   : > { %v2181_v19 = vmul.f32 0.01, %v2117_v46  ;;  %v2118_v26 = vadd.f32 %v2865_v50, %v4037_v42  ;;  %v1984_v48 = vpop.f32.mrb[3].mxu1  ;;  %vm2149_vm2 = vcmp.ge.f32.partialorder %v2117_v46, 0.0 }
 0x356   : > { %v2179_v44 = vmul.f32 0.01, %v2115_v41  ;;  %v2116_v49 = vadd.f32 %v4037_v42, %v1984_v48  ;;  %vm2147_vm3 = vcmp.ge.f32.partialorder %v2115_v41, 0.0 }
 0x357   : > { %vm2150_vm4 = vcmp.ge.f32.partialorder %v2118_v26, 0.0  ;;  %v2182_v52 = vmul.f32 0.01, %v2118_v26  ;;  %v4043_v15 = vsel %vm2149_vm2, %v2117_v46, %v2181_v19 }
 0x358   : > { %vm2148_vm5 = vcmp.ge.f32.partialorder %v2116_v49, 0.0  ;;  %v2180_v58 = vmul.f32 0.01, %v2116_v49  ;;  %v4047_v59 = vsel %vm2147_vm3, %v2115_v41, %v2179_v44 }
 0x359   : > { %v4045_v47 = vsel %vm2150_vm4, %v2118_v26, %v2182_v52 }
 0x35a   : > { %v2935_v23 = vpack.c.bf16 %v4045_v47, %v4043_v15  ;;  %v4051_v54 = vsel %vm2148_vm5, %v2116_v49, %v2180_v58  ;;  %v2868_v62 = vpop.f32.mrb[4].mxu1 }
 0x35b   : > { %v2931_v51 = vpack.c.bf16 %v4051_v54, %v4047_v59  ;;  %v2121_v10 = vadd.f32 %v2868_v62, %v4037_v42  ;;  %v1997_v32 = vpop.f32.mrb[5].mxu1 }
 0x35c   : > { %v2119_v3 = vadd.f32 %v4037_v42, %v1997_v32  ;;  %v2869_v57 = vpop.f32.mrb[6].mxu1 }
 0x35d   : > { %v2185_v2 = vmul.f32 0.01, %v2121_v10  ;;  %v2122_v56 = vadd.f32 %v2869_v57, %v4037_v42  ;;  %v2000_v61 = vpop.f32.mrb[7].mxu1  ;;  %vm2153_vm6 = vcmp.ge.f32.partialorder %v2121_v10, 0.0 }
 0x35e   : > { %v2183_v6 = vmul.f32 0.01, %v2119_v3  ;;  %v2120_v7 = vadd.f32 %v4037_v42, %v2000_v61  ;;  %vm2151_vm7 = vcmp.ge.f32.partialorder %v2119_v3, 0.0 }
 0x35f   : > { %vm2154_vm8 = vcmp.ge.f32.partialorder %v2122_v56, 0.0  ;;  %v2186_v21 = vmul.f32 0.01, %v2122_v56  ;;  %v4059_v22 = vsel %vm2153_vm6, %v2121_v10, %v2185_v2 }
 0x360   : > { %vm2152_vm9 = vcmp.ge.f32.partialorder %v2120_v7, 0.0  ;;  %v2184_v53 = vmul.f32 0.01, %v2120_v7  ;;  %v4063_v30 = vsel %vm2151_vm7, %v2119_v3, %v2183_v6 }
 0x361   : > { %v4061_v60 = vsel %vm2154_vm8, %v2122_v56, %v2186_v21 }
 0x362   : > { %v2943_v9 = vpack.c.bf16 %v4061_v60, %v4059_v22  ;;  %v4067_v39 = vsel %vm2152_vm9, %v2120_v7, %v2184_v53 }
 0x363   : > { %v2939_v12 = vpack.c.bf16 %v4067_v39, %v4063_v30  ;;  %v2872_v16 = vpop.f32.mrb[8].mxu1 }
 0x364   : > { %v2125_v13 = vadd.f32 %v2872_v16, %v4037_v42  ;;  %v2013_v28 = vpop.f32.mrb[9].mxu1 }
 0x365   : > { %v2123_v55 = vadd.f32 %v4037_v42, %v2013_v28  ;;  %v2873_v27 = vpop.f32.mrb[10].mxu1 }
 0x366   : > { %v2189_v17 = vmul.f32 0.01, %v2125_v13  ;;  %v2126_v45 = vadd.f32 %v2873_v27, %v4037_v42  ;;  %v2016_v18 = vpop.f32.mrb[11].mxu1  ;;  %vm2157_vm10 = vcmp.ge.f32.partialorder %v2125_v13, 0.0 }
 0x367   : > { %v2187_v0 = vmul.f32 0.01, %v2123_v55  ;;  %v2124_v14 = vadd.f32 %v4037_v42, %v2016_v18  ;;  %vm2155_vm11 = vcmp.ge.f32.partialorder %v2123_v55, 0.0 }
 0x368   : > { %vm2158_vm12 = vcmp.ge.f32.partialorder %v2126_v45, 0.0  ;;  %v2190_v33 = vmul.f32 0.01, %v2126_v45  ;;  %v4075_v63 = vsel %vm2157_vm10, %v2125_v13, %v2189_v17 }
 0x369   : > { %vm2156_vm13 = vcmp.ge.f32.partialorder %v2124_v14, 0.0  ;;  %v2188_v11 = vmul.f32 0.01, %v2124_v14  ;;  %v4079_v35 = vsel %vm2155_vm11, %v2123_v55, %v2187_v0 }
 0x36a   : > { %v4077_v24 = vsel %vm2158_vm12, %v2126_v45, %v2190_v33 }
 0x36b   : > { %v2951_v4 = vpack.c.bf16 %v4077_v24, %v4075_v63  ;;  %v4083_v34 = vsel %vm2156_vm13, %v2124_v14, %v2188_v11  ;;  %v2876_v25 = vpop.f32.mrb[12].mxu1  ;;  %v2260_v24 = vld [vmem:[#allocation4] sm:$0xff] }
 0x36c   : > { %v2947_v20 = vpack.c.bf16 %v4083_v34, %v4079_v35  ;;  %v2129_v43 = vadd.f32 %v2876_v25, %v4037_v42  ;;  %v2029_v1 = vpop.f32.mrb[13].mxu1 }
 0x36d   : > { %v2127_v31 = vadd.f32 %v4037_v42, %v2029_v1  ;;  %v2877_v36 = vpop.f32.mrb[14].mxu1 }
 0x36e   : > { %v2193_v38 = vmul.f32 0.01, %v2129_v43  ;;  %v2130_v8 = vadd.f32 %v2877_v36, %v4037_v42  ;;  %v2032_v46 = vpop.f32.mrb[15].mxu1  ;;  %vm2161_vm14 = vcmp.ge.f32.partialorder %v2129_v43, 0.0 }
 0x36f   : > { %v2191_v37 = vmul.f32 0.01, %v2127_v31  ;;  %v2128_v41 = vadd.f32 %v4037_v42, %v2032_v46  ;;  %vm2159_vm15 = vcmp.ge.f32.partialorder %v2127_v31, 0.0 }
 0x370   : > { %vm2162_vm0 = vcmp.ge.f32.partialorder %v2130_v8, 0.0  ;;  %v2194_v50 = vmul.f32 0.01, %v2130_v8  ;;  %v4091_v26 = vsel %vm2161_vm14, %v2129_v43, %v2193_v38 }
 0x371   : > { %vm2160_vm2 = vcmp.ge.f32.partialorder %v2128_v41, 0.0  ;;  %v2192_v19 = vmul.f32 0.01, %v2128_v41  ;;  %v4095_v44 = vsel %vm2159_vm15, %v2127_v31, %v2191_v37 }
 0x372   : > { %v4093_v48 = vsel %vm2162_vm0, %v2130_v8, %v2194_v50 }
 0x373   : > { %v2959_v49 = vpack.c.bf16 %v4093_v48, %v4091_v26  ;;  %v4099_v52 = vsel %vm2160_vm2, %v2128_v41, %v2192_v19  ;;  %v2880_v58 = vpop.f32.mrb[16].mxu1  ;;  %v2339_v26 = vld [vmem:[%s4214_s10 + $0x8] sm:$0xff] (!%p2550_p5)  ;;  %v2341_v48 = vld [vmem:[%s4214_s10 + $0x18] sm:$0xff] (!%p2550_p5) }
 0x374   : > { %v2955_v62 = vpack.c.bf16 %v4099_v52, %v4095_v44  ;;  %v2133_v10 = vadd.f32 %v2880_v58, %v4037_v42  ;;  %v2045_v32 = vpop.f32.mrb[17].mxu1  ;;  %v3270_v44 = vmov (!%p2550_p5), 0.0   ;;  %v2342_v52 = vld [vmem:[%s4214_s10 + $0x20] sm:$0xff] (!%p2550_p5) }
 0x375   : > { %v2131_v3 = vadd.f32 %v4037_v42, %v2045_v32  ;;  %v2881_v57 = vpop.f32.mrb[18].mxu1 }
 0x376   : > { %v2197_v2 = vmul.f32 0.01, %v2133_v10  ;;  %v2134_v56 = vadd.f32 %v2881_v57, %v4037_v42  ;;  %v2048_v61 = vpop.f32.mrb[19].mxu1  ;;  %vm2165_vm3 = vcmp.ge.f32.partialorder %v2133_v10, 0.0 }
 0x377   : > { %v2195_v6 = vmul.f32 0.01, %v2131_v3  ;;  %v2132_v7 = vadd.f32 %v4037_v42, %v2048_v61  ;;  %vm2163_vm4 = vcmp.ge.f32.partialorder %v2131_v3, 0.0 }
 0x378   : > { %vm2166_vm5 = vcmp.ge.f32.partialorder %v2134_v56, 0.0  ;;  %v2198_v21 = vmul.f32 0.01, %v2134_v56  ;;  %v2229_v16 = vsel %vm2165_vm3, %v2133_v10, %v2197_v2 }
 0x379   : > { %vm2164_vm6 = vcmp.ge.f32.partialorder %v2132_v7, 0.0  ;;  %v2196_v53 = vmul.f32 0.01, %v2132_v7  ;;  %v2227_v55 = vsel %vm2163_vm4, %v2131_v3, %v2195_v6 }
 0x37a   : > { %v2230_v13 = vsel %vm2166_vm5, %v2134_v56, %v2198_v21 }
 0x37b   : > { %v2884_v28 = vpop.f32.mrb[20].mxu1  ;;  %v2228_v27 = vsel %vm2164_vm6, %v2132_v7, %v2196_v53  ;;  %v2933_v17 = vpack.c.bf16 %v2230_v13, %v2229_v16 }
 0x37c   : > { %v2137_v45 = vadd.f32 %v2884_v28, %v4037_v42  ;;  %v2061_v18 = vpop.f32.mrb[21].mxu1  ;;  %v2929_v0 = vpack.c.bf16 %v2228_v27, %v2227_v55 }
 0x37d   : > { %v2135_v14 = vadd.f32 %v4037_v42, %v2061_v18  ;;  %v2885_v33 = vpop.f32.mrb[22].mxu1 }
 0x37e   : > { %v2201_v11 = vmul.f32 0.01, %v2137_v45  ;;  %v2138_v25 = vadd.f32 %v2885_v33, %v4037_v42  ;;  %v2064_v43 = vpop.f32.mrb[23].mxu1  ;;  %2930 = vmatprep.subr.bf16.mxu0 %v2929_v0  ;;  %vm2169_vm7 = vcmp.ge.f32.partialorder %v2137_v45, 0.0 }
 0x37f   : > { %v2199_v1 = vmul.f32 0.01, %v2135_v14  ;;  %v2136_v31 = vadd.f32 %v4037_v42, %v2064_v43  ;;  %2932 = vmatpush3.bf16.msra.mxu0 %v2931_v51  ;;  %vm2167_vm8 = vcmp.ge.f32.partialorder %v2135_v14, 0.0  ;;  %v2345_v43 = vld [vmem:[%s4214_s10 + $0x38] sm:$0xff] (!%p2550_p5) }
 0x380   : > { %vm2170_vm9 = vcmp.ge.f32.partialorder %v2138_v25, 0.0  ;;  %v2202_v36 = vmul.f32 0.01, %v2138_v25  ;;  %2934 = vmatprep.subr.bf16.mxu0 %v2933_v17  ;;  %v2233_v8 = vsel %vm2169_vm7, %v2137_v45, %v2201_v11 }
 0x381   : > { %vm2168_vm10 = vcmp.ge.f32.partialorder %v2136_v31, 0.0  ;;  %v2200_v38 = vmul.f32 0.01, %v2136_v31  ;;  %v2231_v41 = vsel %vm2167_vm8, %v2135_v14, %v2199_v1 }
 0x382   : > { %v2234_v46 = vsel %vm2170_vm9, %v2138_v25, %v2202_v36  ;;  %v2344_v25 = vld [vmem:[%s4214_s10 + $0x30] sm:$0xff] (!%p2550_p5)  ;;  %v2347_v36 = vld [vmem:[%s4214_s10 + $0x48] sm:$0xff] (!%p2550_p5) }
 0x383   : > { %v2888_v37 = vpop.f32.mrb[24].mxu1  ;;  %2936 = vmatpush3.bf16.msra.mxu0 %v2935_v23  ;;  %v2232_v50 = vsel %vm2168_vm10, %v2136_v31, %v2200_v38  ;;  %v2941_v19 = vpack.c.bf16 %v2234_v46, %v2233_v8  ;;  %v2971_v1 = vpack.c.bf16 (!%p2550_p5), %v2345_v43, %v2344_v25  ;;  %v2346_v31 = vld [vmem:[%s4214_s10 + $0x40] sm:$0xff] (!%p2550_p5)  ;;  %v2348_v8 = vld [vmem:[%s4214_s10 + $0x50] sm:$0xff] (!%p2550_p5)  ;;  %v2349_v46 = vld [vmem:[%s4214_s10 + $0x58] sm:$0xff] (!%p2550_p5) }
 0x384   : > { %v2141_v58 = vadd.f32 %v2888_v37, %v4037_v42  ;;  %v2077_v59 = vpop.f32.mrb[25].mxu1  ;;  %v2937_v54 = vpack.c.bf16 %v2232_v50, %v2231_v41  ;;  %v2974_v38 = vpack.c.bf16 (!%p2550_p5), %v2347_v36, %v2346_v31  ;;  %v2977_v37 = vpack.c.bf16 (!%p2550_p5), %v2349_v46, %v2348_v8  ;;  %v2350_v41 = vld [vmem:[%s4214_s10 + $0x60] sm:$0xff] (!%p2550_p5)  ;;  %v2351_v50 = vld [vmem:[%s4214_s10 + $0x68] sm:$0xff] (!%p2550_p5) }
 0x385   : > { %v2139_v51 = vadd.f32 %v4037_v42, %v2077_v59  ;;  %v2889_v10 = vpop.f32.mrb[26].mxu1  ;;  %v2353_v59 = vld [vmem:[%s4214_s10 + $0x78] sm:$0xff] (!%p2550_p5) }
 0x386   : > { %v2205_v32 = vmul.f32 0.01, %v2141_v58  ;;  %v2142_v3 = vadd.f32 %v2889_v10, %v4037_v42  ;;  %v2080_v57 = vpop.f32.mrb[27].mxu1  ;;  %2938 = vmatprep.subr.bf16.mxu0 %v2937_v54  ;;  %vm2173_vm11 = vcmp.ge.f32.partialorder %v2141_v58, 0.0  ;;  %v2551_v10 = vld [vmem:[%s4215_s11] ss:$0 sm:$0xff] (!%p2550_p5) }
 0x387   : > { %v2203_v2 = vmul.f32 0.01, %v2139_v51  ;;  %v2140_v15 = vadd.f32 %v4037_v42, %v2080_v57  ;;  %2940 = vmatpush3.bf16.msra.mxu0 %v2939_v12  ;;  %vm2171_vm12 = vcmp.ge.f32.partialorder %v2139_v51, 0.0 }
 0x388   : > { %vm2174_vm13 = vcmp.ge.f32.partialorder %v2142_v3, 0.0  ;;  %v2206_v47 = vmul.f32 0.01, %v2142_v3  ;;  %2942 = vmatprep.subr.bf16.mxu0 %v2941_v19  ;;  %v2237_v56 = vsel %vm2173_vm11, %v2141_v58, %v2205_v32  ;;  %v2980_v19 = vpack.c.bf16 (!%p2550_p5), %v2351_v50, %v2350_v41  ;;  %v2352_v58 = vld [vmem:[%s4214_s10 + $0x70] sm:$0xff] (!%p2550_p5) }
 0x389   : > { %vm2172_vm14 = vcmp.ge.f32.partialorder %v2140_v15, 0.0  ;;  %v2204_v23 = vmul.f32 0.01, %v2140_v15  ;;  %v2235_v7 = vsel %vm2171_vm12, %v2139_v51, %v2203_v2  ;;  %v2983_v54 = vpack.c.bf16 (!%p2550_p5), %v2353_v59, %v2352_v58 }
 0x38a   : > { %v2238_v61 = vsel %vm2174_vm13, %v2142_v3, %v2206_v47 }
 0x38b   : > { %v2892_v6 = vpop.f32.mrb[28].mxu1  ;;  %2944 = vmatpush3.bf16.msra.mxu0 %v2943_v9  ;;  %v2236_v21 = vsel %vm2172_vm14, %v2140_v15, %v2204_v23  ;;  %v2949_v53 = vpack.c.bf16 %v2238_v61, %v2237_v56 }
 0x38c   : > { %v2145_v16 = vadd.f32 %v2892_v6, %v4037_v42  ;;  %v2093_v30 = vpop.f32.mrb[29].mxu1  ;;  %v2945_v39 = vpack.c.bf16 %v2236_v21, %v2235_v7 }
 0x38d   : > { %v2143_v12 = vadd.f32 %v4037_v42, %v2093_v30  ;;  %v2893_v13 = vpop.f32.mrb[30].mxu1 }
 0x38e   : > { %v2209_v28 = vmul.f32 0.01, %v2145_v16  ;;  %v2146_v55 = vadd.f32 %v2893_v13, %v4037_v42  ;;  %v2096_v27 = vpop.f32.mrb[31].mxu1  ;;  %2946 = vmatprep.subr.bf16.mxu0 %v2945_v39  ;;  %vm2177_vm15 = vcmp.ge.f32.partialorder %v2145_v16, 0.0 }
 0x38f   : > { %v2207_v17 = vmul.f32 0.01, %v2143_v12  ;;  %v2144_v22 = vadd.f32 %v4037_v42, %v2096_v27  ;;  %2948 = vmatpush3.bf16.msra.mxu0 %v2947_v20  ;;  %vm2175_vm0 = vcmp.ge.f32.partialorder %v2143_v12, 0.0  ;;  %v2338_v20 = vld [vmem:[%s4214_s10] sm:$0xff] (!%p2550_p5) }
 0x390   : > { %vm2178_vm2 = vcmp.ge.f32.partialorder %v2146_v55, 0.0  ;;  %v2210_v60 = vmul.f32 0.01, %v2146_v55  ;;  %2950 = vmatprep.subr.bf16.mxu0 %v2949_v53  ;;  %v2241_v45 = vsel %vm2177_vm15, %v2145_v16, %v2209_v28 }
 0x391   : > { %vm2176_vm3 = vcmp.ge.f32.partialorder %v2144_v22, 0.0  ;;  %v2208_v9 = vmul.f32 0.01, %v2144_v22  ;;  %v2239_v0 = vsel %vm2175_vm0, %v2143_v12, %v2207_v17 }
 0x392   : > { %v2242_v18 = vsel %vm2178_vm2, %v2146_v55, %v2210_v60 }
 0x393   : > { %2952 = vmatpush3.bf16.msra.mxu0 %v2951_v4  ;;  %v2240_v14 = vsel %vm2176_vm3, %v2144_v22, %v2208_v9  ;;  %v2957_v33 = vpack.c.bf16 %v2242_v18, %v2241_v45 }
 0x394   : > { %v2953_v42 = vpack.c.bf16 %v2240_v14, %v2239_v0 }
 0x396   : > { %2954 = vmatprep.subr.bf16.mxu0 %v2953_v42 }
 0x397   : > { %2956 = vmatpush3.bf16.msra.mxu0 %v2955_v62  ;;  %v2343_v62 = vld [vmem:[%s4214_s10 + $0x28] sm:$0xff] (!%p2550_p5) }
 0x398   : > { %2958 = vmatprep.subr.bf16.mxu0 %v2957_v33  ;;  %v2968_v11 = vpack.c.bf16 (!%p2550_p5), %v2343_v62, %v2342_v52 }
 0x39b   : > { %2960 = vmatpush3.bf16.msra.mxu0 %v2959_v49  ;;  %v2965_v49 = vpack.c.bf16 (!%p2550_p5), %v2341_v48, %v2340_v29 }
 0x39c   : > { %2961 = vmatprep.subr.bf16.mxu0 (!%p2550_p5), %v3268_v5 }
 0x39e   : > { %2549 = vmatmul.mubr.msk.f32.vlgmr.msra.gmra.mrb[32].mxu0 %vm2254_vm1, %v3267_v40  ;;  %v2962_v40 = vpack.c.bf16 (!%p2550_p5), %v2339_v26, %v2338_v20  ;;  %vm3269_vm1 = vmmov (!%p2550_p5), 0  }
 0x39f   : > { %2926 = vmatprep.mubr.msk.f32.mxu0 (!%p2550_p5), %vm3269_vm1, %v3270_v44 }
 0x3a0   : > { %2963 = vmatpush3.bf16.msra.mxu0 (!%p2550_p5), %v2962_v40 }
 0x3a1   : > { %2964 = vmatprep.subr.bf16.mxu0 (!%p2550_p5), %v3268_v5 }
 0x3a4   : > { %2966 = vmatpush3.bf16.msra.mxu0 (!%p2550_p5), %v2965_v49 }
 0x3a5   : > { %2967 = vmatprep.subr.bf16.mxu0 (!%p2550_p5), %v3268_v5 }
 0x3a8   : > { %2969 = vmatpush3.bf16.msra.mxu0 (!%p2550_p5), %v2968_v11 }
 0x3a9   : > { %2970 = vmatprep.subr.bf16.mxu0 (!%p2550_p5), %v3268_v5 }
 0x3ac   : > { %2972 = vmatpush3.bf16.msra.mxu0 (!%p2550_p5), %v2971_v1 }
 0x3ad   : > { %2973 = vmatprep.subr.bf16.mxu0 (!%p2550_p5), %v3268_v5 }
 0x3b0   : > { %2975 = vmatpush3.bf16.msra.mxu0 (!%p2550_p5), %v2974_v38 }
 0x3b1   : > { %2976 = vmatprep.subr.bf16.mxu0 (!%p2550_p5), %v3268_v5 }
 0x3b4   : > { %2978 = vmatpush3.bf16.msra.mxu0 (!%p2550_p5), %v2977_v37 }
 0x3b5   : > { %2979 = vmatprep.subr.bf16.mxu0 (!%p2550_p5), %v3268_v5 }
 0x3b8   : > { %2981 = vmatpush3.bf16.msra.mxu0 (!%p2550_p5), %v2980_v19 }
 0x3b9   : > { %2982 = vmatprep.subr.bf16.mxu0 (!%p2550_p5), %v3268_v5 }
 0x3bc   : > { %2984 = vmatpush3.bf16.msra.mxu0 (!%p2550_p5), %v2983_v54 }
 0x471   : > { %v2682_v63 = vpop.f32.mrb[32].mxu0  ;;  %2336 = sbr.rel (%p2550_p5) target bundleno = 1527 (0x5f7), region = 113 }
 0x472   : > { %v2683_v35 = vpop.f32.mrb[33].mxu0 }
 0x473   : > { %v2684_v4 = vadd.f32 %v2683_v35, %v2682_v63 }
 0x475   : > { %v2331_v34 = vadd.f32 %v2684_v4, %v2260_v24 }
 0x477   : > { %2332 = vst [vmem:[#allocation4] sm:$0xff] %v2331_v34 }
 0x47e   : > { %v2337_v51 = vld [vmem:[#allocation4] sm:$0xff] }
 0x47f   : > { %2927 = vmatmul.mubr.f32.vlgmr.msra.gmra.mrb[0].mxu0 %v2337_v51 }
 0x552   : > { %v2427_v32 = vpop.f32.mrb[0].mxu0 }
 0x553   : > { %v2428_v3 = vadd.f32 %v2551_v10, %v2427_v32  ;;  %v2928_v57 = vpop.f32.mrb[1].mxu0 }
 0x555   : > { %v2432_v2 = vmul.f32 0.01, %v2428_v3  ;;  %vm2431_vm4 = vcmp.ge.f32.partialorder %v2428_v3, 0.0 }
 0x557   : > { %v2433_v15 = vsel %vm2431_vm4, %v2428_v3, %v2432_v2 }
 0x558   : > { %v2434_v47 = vmul.f32 %v2433_v15, %v2433_v15 }
 0x55a   : > { %2435 = vadd.xlane.f32.xlu0 %v2434_v47 }
 0x5e7   : > { %v2436_v23 = vpop.xlane.xlu0 %2435 }
 0x5e8   : > { %3195 = vrsqrt.f32 %v2436_v23  ;;  %vm2437_vm5 = vcmp.gt.f32.partialorder %v2436_v23, 1e-24 }
 0x5f2   : > { %v3196_v56 = vpop.eup %3195 }
 0x5f3   : > { %v2439_v61 = vsel %vm2437_vm5, %v3196_v56, 1e+12 }
 0x5f4   : > { %v2440_v6 = vmul.f32 %v2439_v61, %v2433_v15 }
 0x5f6   : > { %2441 = vst [vmem:[%s4216_s12] sm:$0xff] %v2440_v6 }
 0x5f7 PF: > { %s30_s21 = sadd.s32 1, %s3245_s21  }
 0x5f8   : > { %p27_p6 = scmp.ge.s32.totalorder %s30_s21, 4  }
 0x5fa   :  { %29 = sbr.rel (!%p27_p6) target bundleno = 27 (0x1b), region = 175 }

</bundles_post_ra>
